<compile_context>
chip_gen: v7x
topology: tpu7x:2x2x1
jax: 0.10.0
libtpu: 0.0.40
codegen_flags: <defaults>
</compile_context>

<pallas_src>
import math
from functools import partial

import jax
import jax.numpy as jnp
from jax.experimental import pallas as pl
from jax.experimental.pallas import tpu as pltpu

# ----- model dims (small, synthetic) -----
B = 2          # batch
S = 8          # sequence length
H = 32         # hidden size
NH = 4         # num attention heads
DH = H // NH   # head dim
FF = 64        # FFN intermediate size
N_LAYERS = 2
VOCAB = 100
OUT_DIM = 3    # output_dim of the classifier head
OUT_PAD = 128  # lane-dense padded head output width
EPS = 1e-12

_VMEM = pl.BlockSpec(memory_space=pltpu.MemorySpace.VMEM)


# ---------------- in-kernel helpers (pure jnp, traced inside the kernel) ----------------
def _ln(x, g, b):
    mu = jnp.mean(x, axis=-1, keepdims=True)
    var = jnp.mean(jnp.square(x - mu), axis=-1, keepdims=True)
    return (x - mu) * jax.lax.rsqrt(var + EPS) * g + b


def _softmax(s):
    m = jnp.max(s, axis=-1, keepdims=True)
    e = jnp.exp(s - m)
    inv = pl.reciprocal(jnp.sum(e, axis=-1, keepdims=True), approx=True)
    return e * inv


def _gelu(x):  # tanh approximation
    return 0.5 * x * (1.0 + jnp.tanh(0.7978845608028654 * (x + 0.044715 * x * x * x)))


# ---------------- the single fused forward kernel ----------------
def _fused_forward_kernel(x_ref,                       # (B*S, H) word+pos embeddings
                          emb_g_ref, emb_b_ref,        # (1, H) embedding LayerNorm
                          wqkv_ref, bqkv_ref,          # (L, H, 3H), (L, 1, 3H)
                          wo_ref, bo_ref,              # (L, H, H),  (L, 1, H)
                          ln1_g_ref, ln1_b_ref,        # (L, 1, H)
                          w1_ref, b1_ref,              # (L, H, FF), (L, 1, FF)
                          w2_ref, b2_ref,              # (L, FF, H), (L, 1, H)
                          ln2_g_ref, ln2_b_ref,        # (L, 1, H)
                          wout_ref, bout_ref,          # (H, OUT_PAD), (1, OUT_PAD)
                          o_ref):                      # (B*S, OUT_PAD)
    scale = 1.0 / math.sqrt(DH)

    # embedding LayerNorm
    x = _ln(x_ref[...], emb_g_ref[...], emb_b_ref[...])          # (B*S, H)

    # encoder stack, unrolled -> activation stays resident in vregs/VMEM
    for li in range(N_LAYERS):
        wqkv = wqkv_ref[li]
        bqkv = bqkv_ref[li]
        wo = wo_ref[li]
        bo = bo_ref[li]

        # fused QKV projection: one (B*S,H)x(H,3H) matmul, one bias broadcast
        qkv = (jnp.dot(x, wqkv, preferred_element_type=jnp.float32) + bqkv)  # (B*S, 3H)
        q3 = qkv[:, 0 * H:1 * H].reshape(B, S, H)
        k3 = qkv[:, 1 * H:2 * H].reshape(B, S, H)
        v3 = qkv[:, 2 * H:3 * H].reshape(B, S, H)

        # multi-head attention; output projection accumulated per head (no concat)
        attn = bo                                                   # (1, H) -> broadcasts
        for h in range(NH):
            sl = slice(h * DH, (h + 1) * DH)
            qs, ks, vs = q3[:, :, sl], k3[:, :, sl], v3[:, :, sl]   # (B, S, DH)
            scores = jnp.einsum('bqd,bkd->bqk', qs, ks,
                                preferred_element_type=jnp.float32) * scale
            probs = _softmax(scores)                                # (B, S, S)
            ctx = jnp.einsum('bqk,bkd->bqd', probs, vs,
                             preferred_element_type=jnp.float32).reshape(B * S, DH)
            attn = attn + jnp.dot(ctx, wo[sl, :],
                                  preferred_element_type=jnp.float32)

        h1 = _ln(x + attn, ln1_g_ref[li], ln1_b_ref[li])

        # FFN
        ff = _gelu(jnp.dot(h1, w1_ref[li], preferred_element_type=jnp.float32)
                   + b1_ref[li])
        ff2 = jnp.dot(ff, w2_ref[li], preferred_element_type=jnp.float32) + b2_ref[li]
        x = _ln(h1 + ff2, ln2_g_ref[li], ln2_b_ref[li])

    # classifier head on all rows (lane- and sublane-dense store);
    # CLS-row / OUT_DIM selection happens in the JAX wrapper.
    o_ref[...] = (jnp.dot(x, wout_ref[...], preferred_element_type=jnp.float32)
                  + bout_ref[...])


# ---------------- pallas_call wrapper ----------------
def fused_forward_pallas(x2, p):
    args = (x2, p['emb_ln_g'], p['emb_ln_b'],
            p['wqkv'], p['bqkv'], p['wo'], p['bo'],
            p['ln1_g'], p['ln1_b'],
            p['w1'], p['b1'], p['w2'], p['b2'],
            p['ln2_g'], p['ln2_b'],
            p['out_w_pad'], p['out_b_pad'])
    return pl.pallas_call(
        _fused_forward_kernel,
        out_shape=jax.ShapeDtypeStruct((B * S, OUT_PAD), jnp.float32),
        in_specs=[_VMEM] * len(args),
        out_specs=_VMEM,
    )(*args)


# ---------------- parameter init (deterministic, synthetic) ----------------
def init_params(key):
    def nrm(k, shape, std=0.02):
        return (std * jax.random.normal(k, shape)).astype(jnp.float32)

    keys = jax.random.split(key, 3 + N_LAYERS)
    params = {
        'word_emb': nrm(keys[0], (VOCAB, H)),
        'pos_emb': nrm(keys[1], (S, H)),
        'emb_ln_g': jnp.ones((1, H), jnp.float32),
        'emb_ln_b': jnp.zeros((1, H), jnp.float32),
    }

    wqkv, bqkv, wo, bo = [], [], [], []
    ln1g, ln1b, w1, b1, w2, b2, ln2g, ln2b = [], [], [], [], [], [], [], []
    for li in range(N_LAYERS):
        lk = jax.random.split(keys[2 + li], 6)
        wq = nrm(lk[0], (H, H))
        wk = nrm(lk[1], (H, H))
        wv = nrm(lk[2], (H, H))
        wqkv.append(jnp.concatenate([wq, wk, wv], axis=1))          # fused (H, 3H)
        bqkv.append(jnp.zeros((1, 3 * H), jnp.float32))
        wo.append(nrm(lk[3], (H, H)))
        bo.append(jnp.zeros((1, H), jnp.float32))
        ln1g.append(jnp.ones((1, H), jnp.float32))
        ln1b.append(jnp.zeros((1, H), jnp.float32))
        w1.append(nrm(lk[4], (H, FF)))
        b1.append(jnp.zeros((1, FF), jnp.float32))
        w2.append(nrm(lk[5], (FF, H)))
        b2.append(jnp.zeros((1, H), jnp.float32))
        ln2g.append(jnp.ones((1, H), jnp.float32))
        ln2b.append(jnp.zeros((1, H), jnp.float32))

    stack = lambda xs: jnp.stack(xs, axis=0)
    params.update(
        wqkv=stack(wqkv), bqkv=stack(bqkv), wo=stack(wo), bo=stack(bo),
        ln1_g=stack(ln1g), ln1_b=stack(ln1b),
        w1=stack(w1), b1=stack(b1), w2=stack(w2), b2=stack(b2),
        ln2_g=stack(ln2g), ln2_b=stack(ln2b),
    )

    # classifier head: nn.Linear(H, OUT_DIM) with xavier_normal_ weight,
    # padded to a 128-lane output slab (zeros beyond OUT_DIM).
    kw, kb = jax.random.split(keys[2 + N_LAYERS], 2)
    xavier_std = math.sqrt(2.0 / (H + OUT_DIM))
    w_out = (xavier_std * jax.random.normal(kw, (OUT_DIM, H))).astype(jnp.float32)
    bound = 1.0 / math.sqrt(H)
    b_out = jax.random.uniform(kb, (OUT_DIM,), jnp.float32, -bound, bound)
    params['out_w_pad'] = jnp.zeros((H, OUT_PAD), jnp.float32).at[:, :OUT_DIM].set(w_out.T)
    params['out_b_pad'] = jnp.zeros((1, OUT_PAD), jnp.float32).at[:, :OUT_DIM].set(b_out)
    return params


# ---------------- forward (embedding gather / slicing in JAX, compute in Pallas) ----------------
@partial(jax.jit, static_argnums=())
def transformer_classifier_forward(token_ids, params):
    # embedding gather (glue) + flatten to (B*S, H) once, outside the kernel
    x = params['word_emb'][token_ids] + params['pos_emb'][None, :, :]    # (B, S, H)
    x2 = x.reshape(B * S, H).astype(jnp.float32)
    logits_pad = fused_forward_pallas(x2, params)                        # (B*S, OUT_PAD)
    # CLS token rows (0, S, 2S, ...) and the real OUT_DIM columns
    logits = logits_pad[0::S, :OUT_DIM]                                  # (B, OUT_DIM)
    return logits


if __name__ == "__main__":
    key = jax.random.PRNGKey(0)
    k_ids, k_params = jax.random.split(key)
    token_ids = jax.random.randint(k_ids, (B, S), 0, VOCAB, dtype=jnp.int32)
    params = init_params(k_params)

    logits = transformer_classifier_forward(token_ids, params)
    jax.block_until_ready(logits)
    assert logits.shape == (B, OUT_DIM) and logits.dtype == jnp.float32
    print("KERNEL_OK")
</pallas_src>

<mosaic_0001>
module attributes {stable_mosaic.version = 11 : i64} {
  func.func @_fused_forward_kernel(%arg0: memref<16x32xf32, #tpu.memory_space<vmem>>, %arg1: memref<1x32xf32, #tpu.memory_space<vmem>>, %arg2: memref<1x32xf32, #tpu.memory_space<vmem>>, %arg3: memref<2x32x96xf32, #tpu.memory_space<vmem>>, %arg4: memref<2x1x96xf32, #tpu.memory_space<vmem>>, %arg5: memref<2x32x32xf32, #tpu.memory_space<vmem>>, %arg6: memref<2x1x32xf32, #tpu.memory_space<vmem>>, %arg7: memref<2x1x32xf32, #tpu.memory_space<vmem>>, %arg8: memref<2x1x32xf32, #tpu.memory_space<vmem>>, %arg9: memref<2x32x64xf32, #tpu.memory_space<vmem>>, %arg10: memref<2x1x64xf32, #tpu.memory_space<vmem>>, %arg11: memref<2x64x32xf32, #tpu.memory_space<vmem>>, %arg12: memref<2x1x32xf32, #tpu.memory_space<vmem>>, %arg13: memref<2x1x32xf32, #tpu.memory_space<vmem>>, %arg14: memref<2x1x32xf32, #tpu.memory_space<vmem>>, %arg15: memref<32x128xf32, #tpu.memory_space<vmem>>, %arg16: memref<1x128xf32, #tpu.memory_space<vmem>>, %arg17: memref<16x128xf32, #tpu.memory_space<vmem>>) attributes {dimension_semantics = [], scalar_prefetch = 0 : i64, scratch_operands = 0 : i64, tpu.core_type = #tpu.core_type<tc>} {
    %c0 = arith.constant 0 : index
    %c0_0 = arith.constant 0 : index
    %0 = vector.load %arg0[%c0, %c0_0] : memref<16x32xf32, #tpu.memory_space<vmem>>, vector<16x32xf32>
    %c0_1 = arith.constant 0 : index
    %c0_2 = arith.constant 0 : index
    %1 = vector.load %arg1[%c0_1, %c0_2] : memref<1x32xf32, #tpu.memory_space<vmem>>, vector<1x32xf32>
    %c0_3 = arith.constant 0 : index
    %c0_4 = arith.constant 0 : index
    %2 = vector.load %arg2[%c0_3, %c0_4] : memref<1x32xf32, #tpu.memory_space<vmem>>, vector<1x32xf32>
    %cst = arith.constant dense<0.000000e+00> : vector<16xf32>
    %3 = vector.multi_reduction <add>, %0, %cst [1] : vector<16x32xf32> to vector<16xf32>
    %4 = vector.shape_cast %3 : vector<16xf32> to vector<16x1xf32>
    %cst_5 = arith.constant 3.200000e+01 : f32
    %5 = vector.broadcast %cst_5 : f32 to vector<16x1xf32>
    %6 = arith.divf %4, %5 : vector<16x1xf32>
    %7 = vector.broadcast %6 : vector<16x1xf32> to vector<16x32xf32>
    %8 = arith.subf %0, %7 : vector<16x32xf32>
    %9 = arith.mulf %8, %8 : vector<16x32xf32>
    %cst_6 = arith.constant dense<0.000000e+00> : vector<16xf32>
    %10 = vector.multi_reduction <add>, %9, %cst_6 [1] : vector<16x32xf32> to vector<16xf32>
    %11 = vector.shape_cast %10 : vector<16xf32> to vector<16x1xf32>
    %cst_7 = arith.constant 3.200000e+01 : f32
    %12 = vector.broadcast %cst_7 : f32 to vector<16x1xf32>
    %13 = arith.divf %11, %12 : vector<16x1xf32>
    %14 = vector.broadcast %6 : vector<16x1xf32> to vector<16x32xf32>
    %15 = arith.subf %0, %14 : vector<16x32xf32>
    %cst_8 = arith.constant 9.99999996E-13 : f32
    %16 = vector.broadcast %cst_8 : f32 to vector<16x1xf32>
    %17 = arith.addf %13, %16 : vector<16x1xf32>
    %18 = math.rsqrt %17 : vector<16x1xf32>
    %19 = vector.broadcast %18 : vector<16x1xf32> to vector<16x32xf32>
    %20 = arith.mulf %15, %19 : vector<16x32xf32>
    %21 = vector.broadcast %1 : vector<1x32xf32> to vector<16x32xf32>
    %22 = arith.mulf %20, %21 : vector<16x32xf32>
    %23 = vector.broadcast %2 : vector<1x32xf32> to vector<16x32xf32>
    %24 = arith.addf %22, %23 : vector<16x32xf32>
    %c0_9 = arith.constant 0 : index
    %c0_10 = arith.constant 0 : index
    %c0_11 = arith.constant 0 : index
    %25 = vector.load %arg3[%c0_9, %c0_10, %c0_11] : memref<2x32x96xf32, #tpu.memory_space<vmem>>, vector<1x32x96xf32>
    %26 = vector.shape_cast %25 : vector<1x32x96xf32> to vector<32x96xf32>
    %c0_12 = arith.constant 0 : index
    %c0_13 = arith.constant 0 : index
    %c0_14 = arith.constant 0 : index
    %27 = vector.load %arg4[%c0_12, %c0_13, %c0_14] : memref<2x1x96xf32, #tpu.memory_space<vmem>>, vector<1x1x96xf32>
    %28 = vector.shape_cast %27 : vector<1x1x96xf32> to vector<1x96xf32>
    %c0_15 = arith.constant 0 : index
    %c0_16 = arith.constant 0 : index
    %c0_17 = arith.constant 0 : index
    %29 = vector.load %arg5[%c0_15, %c0_16, %c0_17] : memref<2x32x32xf32, #tpu.memory_space<vmem>>, vector<1x32x32xf32>
    %30 = vector.shape_cast %29 : vector<1x32x32xf32> to vector<32x32xf32>
    %c0_18 = arith.constant 0 : index
    %c0_19 = arith.constant 0 : index
    %c0_20 = arith.constant 0 : index
    %31 = vector.load %arg6[%c0_18, %c0_19, %c0_20] : memref<2x1x32xf32, #tpu.memory_space<vmem>>, vector<1x1x32xf32>
    %32 = vector.shape_cast %31 : vector<1x1x32xf32> to vector<1x32xf32>
    %cst_21 = arith.constant dense<0.000000e+00> : vector<16x96xf32>
    %33 = tpu.matmul %24, %26, %cst_21 {dimension_numbers = #tpu.dot_dimension_numbers<[1], [0], [0], [1], [0, 0, 1, 1], [], []>} : vector<16x32xf32>, vector<32x96xf32>, vector<16x96xf32> -> vector<16x96xf32>
    %34 = vector.broadcast %28 : vector<1x96xf32> to vector<16x96xf32>
    %35 = arith.addf %33, %34 : vector<16x96xf32>
    %36 = vector.extract_strided_slice %35 {offsets = [0, 0], sizes = [16, 32], strides = [1, 1]} : vector<16x96xf32> to vector<16x32xf32>
    %37 = vector.shape_cast %36 : vector<16x32xf32> to vector<2x8x32xf32>
    %38 = vector.extract_strided_slice %35 {offsets = [0, 32], sizes = [16, 32], strides = [1, 1]} : vector<16x96xf32> to vector<16x32xf32>
    %39 = vector.shape_cast %38 : vector<16x32xf32> to vector<2x8x32xf32>
    %40 = vector.extract_strided_slice %35 {offsets = [0, 64], sizes = [16, 32], strides = [1, 1]} : vector<16x96xf32> to vector<16x32xf32>
    %41 = vector.shape_cast %40 : vector<16x32xf32> to vector<2x8x32xf32>
    %42 = vector.extract_strided_slice %37 {offsets = [0, 0, 0], sizes = [2, 8, 8], strides = [1, 1, 1]} : vector<2x8x32xf32> to vector<2x8x8xf32>
    %43 = vector.extract_strided_slice %39 {offsets = [0, 0, 0], sizes = [2, 8, 8], strides = [1, 1, 1]} : vector<2x8x32xf32> to vector<2x8x8xf32>
    %44 = vector.extract_strided_slice %41 {offsets = [0, 0, 0], sizes = [2, 8, 8], strides = [1, 1, 1]} : vector<2x8x32xf32> to vector<2x8x8xf32>
    "tpu.trace_start"() <{level = 10 : i32, message = "bqd,bkd->bqk"}> : () -> ()
    %cst_22 = arith.constant dense<0.000000e+00> : vector<2x8x8xf32>
    %45 = tpu.matmul %42, %43, %cst_22 {dimension_numbers = #tpu.dot_dimension_numbers<[2], [2], [1], [1], [0, 0, 0, 1, 1, 1], [0], [0]>} : vector<2x8x8xf32>, vector<2x8x8xf32>, vector<2x8x8xf32> -> vector<2x8x8xf32>
    "tpu.trace_stop"() : () -> ()
    %cst_23 = arith.constant 0.353553385 : f32
    %46 = vector.broadcast %cst_23 : f32 to vector<2x8x8xf32>
    %47 = arith.mulf %45, %46 : vector<2x8x8xf32>
    %cst_24 = arith.constant dense<0xFF800000> : vector<2x8xf32>
    %48 = vector.multi_reduction <maximumf>, %47, %cst_24 [2] : vector<2x8x8xf32> to vector<2x8xf32>
    %49 = vector.shape_cast %48 : vector<2x8xf32> to vector<2x8x1xf32>
    %50 = vector.broadcast %49 : vector<2x8x1xf32> to vector<2x8x8xf32>
    %51 = arith.subf %47, %50 : vector<2x8x8xf32>
    %52 = math.exp %51 : vector<2x8x8xf32>
    %cst_25 = arith.constant dense<0.000000e+00> : vector<2x8xf32>
    %53 = vector.multi_reduction <add>, %52, %cst_25 [2] : vector<2x8x8xf32> to vector<2x8xf32>
    %54 = vector.shape_cast %53 : vector<2x8xf32> to vector<2x8x1xf32>
    %55 = tpu.reciprocal %54 {approx = true} : vector<2x8x1xf32> -> vector<2x8x1xf32>
    %56 = vector.broadcast %55 : vector<2x8x1xf32> to vector<2x8x8xf32>
    %57 = arith.mulf %52, %56 : vector<2x8x8xf32>
    "tpu.trace_start"() <{level = 10 : i32, message = "bqk,bkd->bqd"}> : () -> ()
    %cst_26 = arith.constant dense<0.000000e+00> : vector<2x8x8xf32>
    %58 = tpu.matmul %57, %44, %cst_26 {dimension_numbers = #tpu.dot_dimension_numbers<[2], [1], [1], [2], [0, 0, 0, 1, 1, 2], [0], [0]>} : vector<2x8x8xf32>, vector<2x8x8xf32>, vector<2x8x8xf32> -> vector<2x8x8xf32>
    "tpu.trace_stop"() : () -> ()
    %59 = vector.shape_cast %58 : vector<2x8x8xf32> to vector<16x8xf32>
    %60 = vector.extract_strided_slice %30 {offsets = [0, 0], sizes = [8, 32], strides = [1, 1]} : vector<32x32xf32> to vector<8x32xf32>
    %cst_27 = arith.constant dense<0.000000e+00> : vector<16x32xf32>
    %61 = tpu.matmul %59, %60, %cst_27 {dimension_numbers = #tpu.dot_dimension_numbers<[1], [0], [0], [1], [0, 0, 1, 1], [], []>} : vector<16x8xf32>, vector<8x32xf32>, vector<16x32xf32> -> vector<16x32xf32>
    %62 = vector.broadcast %32 : vector<1x32xf32> to vector<16x32xf32>
    %63 = arith.addf %62, %61 : vector<16x32xf32>
    %64 = vector.extract_strided_slice %37 {offsets = [0, 0, 8], sizes = [2, 8, 8], strides = [1, 1, 1]} : vector<2x8x32xf32> to vector<2x8x8xf32>
    %65 = vector.extract_strided_slice %39 {offsets = [0, 0, 8], sizes = [2, 8, 8], strides = [1, 1, 1]} : vector<2x8x32xf32> to vector<2x8x8xf32>
    %66 = vector.extract_strided_slice %41 {offsets = [0, 0, 8], sizes = [2, 8, 8], strides = [1, 1, 1]} : vector<2x8x32xf32> to vector<2x8x8xf32>
    "tpu.trace_start"() <{level = 10 : i32, message = "bqd,bkd->bqk"}> : () -> ()
    %cst_28 = arith.constant dense<0.000000e+00> : vector<2x8x8xf32>
    %67 = tpu.matmul %64, %65, %cst_28 {dimension_numbers = #tpu.dot_dimension_numbers<[2], [2], [1], [1], [0, 0, 0, 1, 1, 1], [0], [0]>} : vector<2x8x8xf32>, vector<2x8x8xf32>, vector<2x8x8xf32> -> vector<2x8x8xf32>
    "tpu.trace_stop"() : () -> ()
    %cst_29 = arith.constant 0.353553385 : f32
    %68 = vector.broadcast %cst_29 : f32 to vector<2x8x8xf32>
    %69 = arith.mulf %67, %68 : vector<2x8x8xf32>
    %cst_30 = arith.constant dense<0xFF800000> : vector<2x8xf32>
    %70 = vector.multi_reduction <maximumf>, %69, %cst_30 [2] : vector<2x8x8xf32> to vector<2x8xf32>
    %71 = vector.shape_cast %70 : vector<2x8xf32> to vector<2x8x1xf32>
    %72 = vector.broadcast %71 : vector<2x8x1xf32> to vector<2x8x8xf32>
    %73 = arith.subf %69, %72 : vector<2x8x8xf32>
    %74 = math.exp %73 : vector<2x8x8xf32>
    %cst_31 = arith.constant dense<0.000000e+00> : vector<2x8xf32>
    %75 = vector.multi_reduction <add>, %74, %cst_31 [2] : vector<2x8x8xf32> to vector<2x8xf32>
    %76 = vector.shape_cast %75 : vector<2x8xf32> to vector<2x8x1xf32>
    %77 = tpu.reciprocal %76 {approx = true} : vector<2x8x1xf32> -> vector<2x8x1xf32>
    %78 = vector.broadcast %77 : vector<2x8x1xf32> to vector<2x8x8xf32>
    %79 = arith.mulf %74, %78 : vector<2x8x8xf32>
    "tpu.trace_start"() <{level = 10 : i32, message = "bqk,bkd->bqd"}> : () -> ()
    %cst_32 = arith.constant dense<0.000000e+00> : vector<2x8x8xf32>
    %80 = tpu.matmul %79, %66, %cst_32 {dimension_numbers = #tpu.dot_dimension_numbers<[2], [1], [1], [2], [0, 0, 0, 1, 1, 2], [0], [0]>} : vector<2x8x8xf32>, vector<2x8x8xf32>, vector<2x8x8xf32> -> vector<2x8x8xf32>
    "tpu.trace_stop"() : () -> ()
    %81 = vector.shape_cast %80 : vector<2x8x8xf32> to vector<16x8xf32>
    %82 = vector.extract_strided_slice %30 {offsets = [8, 0], sizes = [8, 32], strides = [1, 1]} : vector<32x32xf32> to vector<8x32xf32>
    %cst_33 = arith.constant dense<0.000000e+00> : vector<16x32xf32>
    %83 = tpu.matmul %81, %82, %cst_33 {dimension_numbers = #tpu.dot_dimension_numbers<[1], [0], [0], [1], [0, 0, 1, 1], [], []>} : vector<16x8xf32>, vector<8x32xf32>, vector<16x32xf32> -> vector<16x32xf32>
    %84 = arith.addf %63, %83 : vector<16x32xf32>
    %85 = vector.extract_strided_slice %37 {offsets = [0, 0, 16], sizes = [2, 8, 8], strides = [1, 1, 1]} : vector<2x8x32xf32> to vector<2x8x8xf32>
    %86 = vector.extract_strided_slice %39 {offsets = [0, 0, 16], sizes = [2, 8, 8], strides = [1, 1, 1]} : vector<2x8x32xf32> to vector<2x8x8xf32>
    %87 = vector.extract_strided_slice %41 {offsets = [0, 0, 16], sizes = [2, 8, 8], strides = [1, 1, 1]} : vector<2x8x32xf32> to vector<2x8x8xf32>
    "tpu.trace_start"() <{level = 10 : i32, message = "bqd,bkd->bqk"}> : () -> ()
    %cst_34 = arith.constant dense<0.000000e+00> : vector<2x8x8xf32>
    %88 = tpu.matmul %85, %86, %cst_34 {dimension_numbers = #tpu.dot_dimension_numbers<[2], [2], [1], [1], [0, 0, 0, 1, 1, 1], [0], [0]>} : vector<2x8x8xf32>, vector<2x8x8xf32>, vector<2x8x8xf32> -> vector<2x8x8xf32>
    "tpu.trace_stop"() : () -> ()
    %cst_35 = arith.constant 0.353553385 : f32
    %89 = vector.broadcast %cst_35 : f32 to vector<2x8x8xf32>
    %90 = arith.mulf %88, %89 : vector<2x8x8xf32>
    %cst_36 = arith.constant dense<0xFF800000> : vector<2x8xf32>
    %91 = vector.multi_reduction <maximumf>, %90, %cst_36 [2] : vector<2x8x8xf32> to vector<2x8xf32>
    %92 = vector.shape_cast %91 : vector<2x8xf32> to vector<2x8x1xf32>
    %93 = vector.broadcast %92 : vector<2x8x1xf32> to vector<2x8x8xf32>
    %94 = arith.subf %90, %93 : vector<2x8x8xf32>
    %95 = math.exp %94 : vector<2x8x8xf32>
    %cst_37 = arith.constant dense<0.000000e+00> : vector<2x8xf32>
    %96 = vector.multi_reduction <add>, %95, %cst_37 [2] : vector<2x8x8xf32> to vector<2x8xf32>
    %97 = vector.shape_cast %96 : vector<2x8xf32> to vector<2x8x1xf32>
    %98 = tpu.reciprocal %97 {approx = true} : vector<2x8x1xf32> -> vector<2x8x1xf32>
    %99 = vector.broadcast %98 : vector<2x8x1xf32> to vector<2x8x8xf32>
    %100 = arith.mulf %95, %99 : vector<2x8x8xf32>
    "tpu.trace_start"() <{level = 10 : i32, message = "bqk,bkd->bqd"}> : () -> ()
    %cst_38 = arith.constant dense<0.000000e+00> : vector<2x8x8xf32>
    %101 = tpu.matmul %100, %87, %cst_38 {dimension_numbers = #tpu.dot_dimension_numbers<[2], [1], [1], [2], [0, 0, 0, 1, 1, 2], [0], [0]>} : vector<2x8x8xf32>, vector<2x8x8xf32>, vector<2x8x8xf32> -> vector<2x8x8xf32>
    "tpu.trace_stop"() : () -> ()
    %102 = vector.shape_cast %101 : vector<2x8x8xf32> to vector<16x8xf32>
    %103 = vector.extract_strided_slice %30 {offsets = [16, 0], sizes = [8, 32], strides = [1, 1]} : vector<32x32xf32> to vector<8x32xf32>
    %cst_39 = arith.constant dense<0.000000e+00> : vector<16x32xf32>
    %104 = tpu.matmul %102, %103, %cst_39 {dimension_numbers = #tpu.dot_dimension_numbers<[1], [0], [0], [1], [0, 0, 1, 1], [], []>} : vector<16x8xf32>, vector<8x32xf32>, vector<16x32xf32> -> vector<16x32xf32>
    %105 = arith.addf %84, %104 : vector<16x32xf32>
    %106 = vector.extract_strided_slice %37 {offsets = [0, 0, 24], sizes = [2, 8, 8], strides = [1, 1, 1]} : vector<2x8x32xf32> to vector<2x8x8xf32>
    %107 = vector.extract_strided_slice %39 {offsets = [0, 0, 24], sizes = [2, 8, 8], strides = [1, 1, 1]} : vector<2x8x32xf32> to vector<2x8x8xf32>
    %108 = vector.extract_strided_slice %41 {offsets = [0, 0, 24], sizes = [2, 8, 8], strides = [1, 1, 1]} : vector<2x8x32xf32> to vector<2x8x8xf32>
    "tpu.trace_start"() <{level = 10 : i32, message = "bqd,bkd->bqk"}> : () -> ()
    %cst_40 = arith.constant dense<0.000000e+00> : vector<2x8x8xf32>
    %109 = tpu.matmul %106, %107, %cst_40 {dimension_numbers = #tpu.dot_dimension_numbers<[2], [2], [1], [1], [0, 0, 0, 1, 1, 1], [0], [0]>} : vector<2x8x8xf32>, vector<2x8x8xf32>, vector<2x8x8xf32> -> vector<2x8x8xf32>
    "tpu.trace_stop"() : () -> ()
    %cst_41 = arith.constant 0.353553385 : f32
    %110 = vector.broadcast %cst_41 : f32 to vector<2x8x8xf32>
    %111 = arith.mulf %109, %110 : vector<2x8x8xf32>
    %cst_42 = arith.constant dense<0xFF800000> : vector<2x8xf32>
    %112 = vector.multi_reduction <maximumf>, %111, %cst_42 [2] : vector<2x8x8xf32> to vector<2x8xf32>
    %113 = vector.shape_cast %112 : vector<2x8xf32> to vector<2x8x1xf32>
    %114 = vector.broadcast %113 : vector<2x8x1xf32> to vector<2x8x8xf32>
    %115 = arith.subf %111, %114 : vector<2x8x8xf32>
    %116 = math.exp %115 : vector<2x8x8xf32>
    %cst_43 = arith.constant dense<0.000000e+00> : vector<2x8xf32>
    %117 = vector.multi_reduction <add>, %116, %cst_43 [2] : vector<2x8x8xf32> to vector<2x8xf32>
    %118 = vector.shape_cast %117 : vector<2x8xf32> to vector<2x8x1xf32>
    %119 = tpu.reciprocal %118 {approx = true} : vector<2x8x1xf32> -> vector<2x8x1xf32>
    %120 = vector.broadcast %119 : vector<2x8x1xf32> to vector<2x8x8xf32>
    %121 = arith.mulf %116, %120 : vector<2x8x8xf32>
    "tpu.trace_start"() <{level = 10 : i32, message = "bqk,bkd->bqd"}> : () -> ()
    %cst_44 = arith.constant dense<0.000000e+00> : vector<2x8x8xf32>
    %122 = tpu.matmul %121, %108, %cst_44 {dimension_numbers = #tpu.dot_dimension_numbers<[2], [1], [1], [2], [0, 0, 0, 1, 1, 2], [0], [0]>} : vector<2x8x8xf32>, vector<2x8x8xf32>, vector<2x8x8xf32> -> vector<2x8x8xf32>
    "tpu.trace_stop"() : () -> ()
    %123 = vector.shape_cast %122 : vector<2x8x8xf32> to vector<16x8xf32>
    %124 = vector.extract_strided_slice %30 {offsets = [24, 0], sizes = [8, 32], strides = [1, 1]} : vector<32x32xf32> to vector<8x32xf32>
    %cst_45 = arith.constant dense<0.000000e+00> : vector<16x32xf32>
    %125 = tpu.matmul %123, %124, %cst_45 {dimension_numbers = #tpu.dot_dimension_numbers<[1], [0], [0], [1], [0, 0, 1, 1], [], []>} : vector<16x8xf32>, vector<8x32xf32>, vector<16x32xf32> -> vector<16x32xf32>
    %126 = arith.addf %105, %125 : vector<16x32xf32>
    %127 = arith.addf %24, %126 : vector<16x32xf32>
    %c0_46 = arith.constant 0 : index
    %c0_47 = arith.constant 0 : index
    %c0_48 = arith.constant 0 : index
    %128 = vector.load %arg7[%c0_46, %c0_47, %c0_48] : memref<2x1x32xf32, #tpu.memory_space<vmem>>, vector<1x1x32xf32>
    %129 = vector.shape_cast %128 : vector<1x1x32xf32> to vector<1x32xf32>
    %c0_49 = arith.constant 0 : index
    %c0_50 = arith.constant 0 : index
    %c0_51 = arith.constant 0 : index
    %130 = vector.load %arg8[%c0_49, %c0_50, %c0_51] : memref<2x1x32xf32, #tpu.memory_space<vmem>>, vector<1x1x32xf32>
    %131 = vector.shape_cast %130 : vector<1x1x32xf32> to vector<1x32xf32>
    %cst_52 = arith.constant dense<0.000000e+00> : vector<16xf32>
    %132 = vector.multi_reduction <add>, %127, %cst_52 [1] : vector<16x32xf32> to vector<16xf32>
    %133 = vector.shape_cast %132 : vector<16xf32> to vector<16x1xf32>
    %cst_53 = arith.constant 3.200000e+01 : f32
    %134 = vector.broadcast %cst_53 : f32 to vector<16x1xf32>
    %135 = arith.divf %133, %134 : vector<16x1xf32>
    %136 = vector.broadcast %135 : vector<16x1xf32> to vector<16x32xf32>
    %137 = arith.subf %127, %136 : vector<16x32xf32>
    %138 = arith.mulf %137, %137 : vector<16x32xf32>
    %cst_54 = arith.constant dense<0.000000e+00> : vector<16xf32>
    %139 = vector.multi_reduction <add>, %138, %cst_54 [1] : vector<16x32xf32> to vector<16xf32>
    %140 = vector.shape_cast %139 : vector<16xf32> to vector<16x1xf32>
    %cst_55 = arith.constant 3.200000e+01 : f32
    %141 = vector.broadcast %cst_55 : f32 to vector<16x1xf32>
    %142 = arith.divf %140, %141 : vector<16x1xf32>
    %143 = vector.broadcast %135 : vector<16x1xf32> to vector<16x32xf32>
    %144 = arith.subf %127, %143 : vector<16x32xf32>
    %cst_56 = arith.constant 9.99999996E-13 : f32
    %145 = vector.broadcast %cst_56 : f32 to vector<16x1xf32>
    %146 = arith.addf %142, %145 : vector<16x1xf32>
    %147 = math.rsqrt %146 : vector<16x1xf32>
    %148 = vector.broadcast %147 : vector<16x1xf32> to vector<16x32xf32>
    %149 = arith.mulf %144, %148 : vector<16x32xf32>
    %150 = vector.broadcast %129 : vector<1x32xf32> to vector<16x32xf32>
    %151 = arith.mulf %149, %150 : vector<16x32xf32>
    %152 = vector.broadcast %131 : vector<1x32xf32> to vector<16x32xf32>
    %153 = arith.addf %151, %152 : vector<16x32xf32>
    %c0_57 = arith.constant 0 : index
    %c0_58 = arith.constant 0 : index
    %c0_59 = arith.constant 0 : index
    %154 = vector.load %arg9[%c0_57, %c0_58, %c0_59] : memref<2x32x64xf32, #tpu.memory_space<vmem>>, vector<1x32x64xf32>
    %155 = vector.shape_cast %154 : vector<1x32x64xf32> to vector<32x64xf32>
    %cst_60 = arith.constant dense<0.000000e+00> : vector<16x64xf32>
    %156 = tpu.matmul %153, %155, %cst_60 {dimension_numbers = #tpu.dot_dimension_numbers<[1], [0], [0], [1], [0, 0, 1, 1], [], []>} : vector<16x32xf32>, vector<32x64xf32>, vector<16x64xf32> -> vector<16x64xf32>
    %c0_61 = arith.constant 0 : index
    %c0_62 = arith.constant 0 : index
    %c0_63 = arith.constant 0 : index
    %157 = vector.load %arg10[%c0_61, %c0_62, %c0_63] : memref<2x1x64xf32, #tpu.memory_space<vmem>>, vector<1x1x64xf32>
    %158 = vector.shape_cast %157 : vector<1x1x64xf32> to vector<1x64xf32>
    %159 = vector.broadcast %158 : vector<1x64xf32> to vector<16x64xf32>
    %160 = arith.addf %156, %159 : vector<16x64xf32>
    %cst_64 = arith.constant 5.000000e-01 : f32
    %161 = vector.broadcast %cst_64 : f32 to vector<16x64xf32>
    %162 = arith.mulf %161, %160 : vector<16x64xf32>
    %cst_65 = arith.constant 4.471500e-02 : f32
    %163 = vector.broadcast %cst_65 : f32 to vector<16x64xf32>
    %164 = arith.mulf %163, %160 : vector<16x64xf32>
    %165 = arith.mulf %164, %160 : vector<16x64xf32>
    %166 = arith.mulf %165, %160 : vector<16x64xf32>
    %167 = arith.addf %160, %166 : vector<16x64xf32>
    %cst_66 = arith.constant 0.797884583 : f32
    %168 = vector.broadcast %cst_66 : f32 to vector<16x64xf32>
    %169 = arith.mulf %168, %167 : vector<16x64xf32>
    %170 = math.tanh %169 : vector<16x64xf32>
    %cst_67 = arith.constant 1.000000e+00 : f32
    %171 = vector.broadcast %cst_67 : f32 to vector<16x64xf32>
    %172 = arith.addf %171, %170 : vector<16x64xf32>
    %173 = arith.mulf %162, %172 : vector<16x64xf32>
    %c0_68 = arith.constant 0 : index
    %c0_69 = arith.constant 0 : index
    %c0_70 = arith.constant 0 : index
    %174 = vector.load %arg11[%c0_68, %c0_69, %c0_70] : memref<2x64x32xf32, #tpu.memory_space<vmem>>, vector<1x64x32xf32>
    %175 = vector.shape_cast %174 : vector<1x64x32xf32> to vector<64x32xf32>
    %cst_71 = arith.constant dense<0.000000e+00> : vector<16x32xf32>
    %176 = tpu.matmul %173, %175, %cst_71 {dimension_numbers = #tpu.dot_dimension_numbers<[1], [0], [0], [1], [0, 0, 1, 1], [], []>} : vector<16x64xf32>, vector<64x32xf32>, vector<16x32xf32> -> vector<16x32xf32>
    %c0_72 = arith.constant 0 : index
    %c0_73 = arith.constant 0 : index
    %c0_74 = arith.constant 0 : index
    %177 = vector.load %arg12[%c0_72, %c0_73, %c0_74] : memref<2x1x32xf32, #tpu.memory_space<vmem>>, vector<1x1x32xf32>
    %178 = vector.shape_cast %177 : vector<1x1x32xf32> to vector<1x32xf32>
    %179 = vector.broadcast %178 : vector<1x32xf32> to vector<16x32xf32>
    %180 = arith.addf %176, %179 : vector<16x32xf32>
    %181 = arith.addf %153, %180 : vector<16x32xf32>
    %c0_75 = arith.constant 0 : index
    %c0_76 = arith.constant 0 : index
    %c0_77 = arith.constant 0 : index
    %182 = vector.load %arg13[%c0_75, %c0_76, %c0_77] : memref<2x1x32xf32, #tpu.memory_space<vmem>>, vector<1x1x32xf32>
    %183 = vector.shape_cast %182 : vector<1x1x32xf32> to vector<1x32xf32>
    %c0_78 = arith.constant 0 : index
    %c0_79 = arith.constant 0 : index
    %c0_80 = arith.constant 0 : index
    %184 = vector.load %arg14[%c0_78, %c0_79, %c0_80] : memref<2x1x32xf32, #tpu.memory_space<vmem>>, vector<1x1x32xf32>
    %185 = vector.shape_cast %184 : vector<1x1x32xf32> to vector<1x32xf32>
    %cst_81 = arith.constant dense<0.000000e+00> : vector<16xf32>
    %186 = vector.multi_reduction <add>, %181, %cst_81 [1] : vector<16x32xf32> to vector<16xf32>
    %187 = vector.shape_cast %186 : vector<16xf32> to vector<16x1xf32>
    %cst_82 = arith.constant 3.200000e+01 : f32
    %188 = vector.broadcast %cst_82 : f32 to vector<16x1xf32>
    %189 = arith.divf %187, %188 : vector<16x1xf32>
    %190 = vector.broadcast %189 : vector<16x1xf32> to vector<16x32xf32>
    %191 = arith.subf %181, %190 : vector<16x32xf32>
    %192 = arith.mulf %191, %191 : vector<16x32xf32>
    %cst_83 = arith.constant dense<0.000000e+00> : vector<16xf32>
    %193 = vector.multi_reduction <add>, %192, %cst_83 [1] : vector<16x32xf32> to vector<16xf32>
    %194 = vector.shape_cast %193 : vector<16xf32> to vector<16x1xf32>
    %cst_84 = arith.constant 3.200000e+01 : f32
    %195 = vector.broadcast %cst_84 : f32 to vector<16x1xf32>
    %196 = arith.divf %194, %195 : vector<16x1xf32>
    %197 = vector.broadcast %189 : vector<16x1xf32> to vector<16x32xf32>
    %198 = arith.subf %181, %197 : vector<16x32xf32>
    %cst_85 = arith.constant 9.99999996E-13 : f32
    %199 = vector.broadcast %cst_85 : f32 to vector<16x1xf32>
    %200 = arith.addf %196, %199 : vector<16x1xf32>
    %201 = math.rsqrt %200 : vector<16x1xf32>
    %202 = vector.broadcast %201 : vector<16x1xf32> to vector<16x32xf32>
    %203 = arith.mulf %198, %202 : vector<16x32xf32>
    %204 = vector.broadcast %183 : vector<1x32xf32> to vector<16x32xf32>
    %205 = arith.mulf %203, %204 : vector<16x32xf32>
    %206 = vector.broadcast %185 : vector<1x32xf32> to vector<16x32xf32>
    %207 = arith.addf %205, %206 : vector<16x32xf32>
    %c1 = arith.constant 1 : index
    %c0_86 = arith.constant 0 : index
    %c0_87 = arith.constant 0 : index
    %208 = vector.load %arg3[%c1, %c0_86, %c0_87] : memref<2x32x96xf32, #tpu.memory_space<vmem>>, vector<1x32x96xf32>
    %209 = vector.shape_cast %208 : vector<1x32x96xf32> to vector<32x96xf32>
    %c1_88 = arith.constant 1 : index
    %c0_89 = arith.constant 0 : index
    %c0_90 = arith.constant 0 : index
    %210 = vector.load %arg4[%c1_88, %c0_89, %c0_90] : memref<2x1x96xf32, #tpu.memory_space<vmem>>, vector<1x1x96xf32>
    %211 = vector.shape_cast %210 : vector<1x1x96xf32> to vector<1x96xf32>
    %c1_91 = arith.constant 1 : index
    %c0_92 = arith.constant 0 : index
    %c0_93 = arith.constant 0 : index
    %212 = vector.load %arg5[%c1_91, %c0_92, %c0_93] : memref<2x32x32xf32, #tpu.memory_space<vmem>>, vector<1x32x32xf32>
    %213 = vector.shape_cast %212 : vector<1x32x32xf32> to vector<32x32xf32>
    %c1_94 = arith.constant 1 : index
    %c0_95 = arith.constant 0 : index
    %c0_96 = arith.constant 0 : index
    %214 = vector.load %arg6[%c1_94, %c0_95, %c0_96] : memref<2x1x32xf32, #tpu.memory_space<vmem>>, vector<1x1x32xf32>
    %215 = vector.shape_cast %214 : vector<1x1x32xf32> to vector<1x32xf32>
    %cst_97 = arith.constant dense<0.000000e+00> : vector<16x96xf32>
    %216 = tpu.matmul %207, %209, %cst_97 {dimension_numbers = #tpu.dot_dimension_numbers<[1], [0], [0], [1], [0, 0, 1, 1], [], []>} : vector<16x32xf32>, vector<32x96xf32>, vector<16x96xf32> -> vector<16x96xf32>
    %217 = vector.broadcast %211 : vector<1x96xf32> to vector<16x96xf32>
    %218 = arith.addf %216, %217 : vector<16x96xf32>
    %219 = vector.extract_strided_slice %218 {offsets = [0, 0], sizes = [16, 32], strides = [1, 1]} : vector<16x96xf32> to vector<16x32xf32>
    %220 = vector.shape_cast %219 : vector<16x32xf32> to vector<2x8x32xf32>
    %221 = vector.extract_strided_slice %218 {offsets = [0, 32], sizes = [16, 32], strides = [1, 1]} : vector<16x96xf32> to vector<16x32xf32>
    %222 = vector.shape_cast %221 : vector<16x32xf32> to vector<2x8x32xf32>
    %223 = vector.extract_strided_slice %218 {offsets = [0, 64], sizes = [16, 32], strides = [1, 1]} : vector<16x96xf32> to vector<16x32xf32>
    %224 = vector.shape_cast %223 : vector<16x32xf32> to vector<2x8x32xf32>
    %225 = vector.extract_strided_slice %220 {offsets = [0, 0, 0], sizes = [2, 8, 8], strides = [1, 1, 1]} : vector<2x8x32xf32> to vector<2x8x8xf32>
    %226 = vector.extract_strided_slice %222 {offsets = [0, 0, 0], sizes = [2, 8, 8], strides = [1, 1, 1]} : vector<2x8x32xf32> to vector<2x8x8xf32>
    %227 = vector.extract_strided_slice %224 {offsets = [0, 0, 0], sizes = [2, 8, 8], strides = [1, 1, 1]} : vector<2x8x32xf32> to vector<2x8x8xf32>
    "tpu.trace_start"() <{level = 10 : i32, message = "bqd,bkd->bqk"}> : () -> ()
    %cst_98 = arith.constant dense<0.000000e+00> : vector<2x8x8xf32>
    %228 = tpu.matmul %225, %226, %cst_98 {dimension_numbers = #tpu.dot_dimension_numbers<[2], [2], [1], [1], [0, 0, 0, 1, 1, 1], [0], [0]>} : vector<2x8x8xf32>, vector<2x8x8xf32>, vector<2x8x8xf32> -> vector<2x8x8xf32>
    "tpu.trace_stop"() : () -> ()
    %cst_99 = arith.constant 0.353553385 : f32
    %229 = vector.broadcast %cst_99 : f32 to vector<2x8x8xf32>
    %230 = arith.mulf %228, %229 : vector<2x8x8xf32>
    %cst_100 = arith.constant dense<0xFF800000> : vector<2x8xf32>
    %231 = vector.multi_reduction <maximumf>, %230, %cst_100 [2] : vector<2x8x8xf32> to vector<2x8xf32>
    %232 = vector.shape_cast %231 : vector<2x8xf32> to vector<2x8x1xf32>
    %233 = vector.broadcast %232 : vector<2x8x1xf32> to vector<2x8x8xf32>
    %234 = arith.subf %230, %233 : vector<2x8x8xf32>
    %235 = math.exp %234 : vector<2x8x8xf32>
    %cst_101 = arith.constant dense<0.000000e+00> : vector<2x8xf32>
    %236 = vector.multi_reduction <add>, %235, %cst_101 [2] : vector<2x8x8xf32> to vector<2x8xf32>
    %237 = vector.shape_cast %236 : vector<2x8xf32> to vector<2x8x1xf32>
    %238 = tpu.reciprocal %237 {approx = true} : vector<2x8x1xf32> -> vector<2x8x1xf32>
    %239 = vector.broadcast %238 : vector<2x8x1xf32> to vector<2x8x8xf32>
    %240 = arith.mulf %235, %239 : vector<2x8x8xf32>
    "tpu.trace_start"() <{level = 10 : i32, message = "bqk,bkd->bqd"}> : () -> ()
    %cst_102 = arith.constant dense<0.000000e+00> : vector<2x8x8xf32>
    %241 = tpu.matmul %240, %227, %cst_102 {dimension_numbers = #tpu.dot_dimension_numbers<[2], [1], [1], [2], [0, 0, 0, 1, 1, 2], [0], [0]>} : vector<2x8x8xf32>, vector<2x8x8xf32>, vector<2x8x8xf32> -> vector<2x8x8xf32>
    "tpu.trace_stop"() : () -> ()
    %242 = vector.shape_cast %241 : vector<2x8x8xf32> to vector<16x8xf32>
    %243 = vector.extract_strided_slice %213 {offsets = [0, 0], sizes = [8, 32], strides = [1, 1]} : vector<32x32xf32> to vector<8x32xf32>
    %cst_103 = arith.constant dense<0.000000e+00> : vector<16x32xf32>
    %244 = tpu.matmul %242, %243, %cst_103 {dimension_numbers = #tpu.dot_dimension_numbers<[1], [0], [0], [1], [0, 0, 1, 1], [], []>} : vector<16x8xf32>, vector<8x32xf32>, vector<16x32xf32> -> vector<16x32xf32>
    %245 = vector.broadcast %215 : vector<1x32xf32> to vector<16x32xf32>
    %246 = arith.addf %245, %244 : vector<16x32xf32>
    %247 = vector.extract_strided_slice %220 {offsets = [0, 0, 8], sizes = [2, 8, 8], strides = [1, 1, 1]} : vector<2x8x32xf32> to vector<2x8x8xf32>
    %248 = vector.extract_strided_slice %222 {offsets = [0, 0, 8], sizes = [2, 8, 8], strides = [1, 1, 1]} : vector<2x8x32xf32> to vector<2x8x8xf32>
    %249 = vector.extract_strided_slice %224 {offsets = [0, 0, 8], sizes = [2, 8, 8], strides = [1, 1, 1]} : vector<2x8x32xf32> to vector<2x8x8xf32>
    "tpu.trace_start"() <{level = 10 : i32, message = "bqd,bkd->bqk"}> : () -> ()
    %cst_104 = arith.constant dense<0.000000e+00> : vector<2x8x8xf32>
    %250 = tpu.matmul %247, %248, %cst_104 {dimension_numbers = #tpu.dot_dimension_numbers<[2], [2], [1], [1], [0, 0, 0, 1, 1, 1], [0], [0]>} : vector<2x8x8xf32>, vector<2x8x8xf32>, vector<2x8x8xf32> -> vector<2x8x8xf32>
    "tpu.trace_stop"() : () -> ()
    %cst_105 = arith.constant 0.353553385 : f32
    %251 = vector.broadcast %cst_105 : f32 to vector<2x8x8xf32>
    %252 = arith.mulf %250, %251 : vector<2x8x8xf32>
    %cst_106 = arith.constant dense<0xFF800000> : vector<2x8xf32>
    %253 = vector.multi_reduction <maximumf>, %252, %cst_106 [2] : vector<2x8x8xf32> to vector<2x8xf32>
    %254 = vector.shape_cast %253 : vector<2x8xf32> to vector<2x8x1xf32>
    %255 = vector.broadcast %254 : vector<2x8x1xf32> to vector<2x8x8xf32>
    %256 = arith.subf %252, %255 : vector<2x8x8xf32>
    %257 = math.exp %256 : vector<2x8x8xf32>
    %cst_107 = arith.constant dense<0.000000e+00> : vector<2x8xf32>
    %258 = vector.multi_reduction <add>, %257, %cst_107 [2] : vector<2x8x8xf32> to vector<2x8xf32>
    %259 = vector.shape_cast %258 : vector<2x8xf32> to vector<2x8x1xf32>
    %260 = tpu.reciprocal %259 {approx = true} : vector<2x8x1xf32> -> vector<2x8x1xf32>
    %261 = vector.broadcast %260 : vector<2x8x1xf32> to vector<2x8x8xf32>
    %262 = arith.mulf %257, %261 : vector<2x8x8xf32>
    "tpu.trace_start"() <{level = 10 : i32, message = "bqk,bkd->bqd"}> : () -> ()
    %cst_108 = arith.constant dense<0.000000e+00> : vector<2x8x8xf32>
    %263 = tpu.matmul %262, %249, %cst_108 {dimension_numbers = #tpu.dot_dimension_numbers<[2], [1], [1], [2], [0, 0, 0, 1, 1, 2], [0], [0]>} : vector<2x8x8xf32>, vector<2x8x8xf32>, vector<2x8x8xf32> -> vector<2x8x8xf32>
    "tpu.trace_stop"() : () -> ()
    %264 = vector.shape_cast %263 : vector<2x8x8xf32> to vector<16x8xf32>
    %265 = vector.extract_strided_slice %213 {offsets = [8, 0], sizes = [8, 32], strides = [1, 1]} : vector<32x32xf32> to vector<8x32xf32>
    %cst_109 = arith.constant dense<0.000000e+00> : vector<16x32xf32>
    %266 = tpu.matmul %264, %265, %cst_109 {dimension_numbers = #tpu.dot_dimension_numbers<[1], [0], [0], [1], [0, 0, 1, 1], [], []>} : vector<16x8xf32>, vector<8x32xf32>, vector<16x32xf32> -> vector<16x32xf32>
    %267 = arith.addf %246, %266 : vector<16x32xf32>
    %268 = vector.extract_strided_slice %220 {offsets = [0, 0, 16], sizes = [2, 8, 8], strides = [1, 1, 1]} : vector<2x8x32xf32> to vector<2x8x8xf32>
    %269 = vector.extract_strided_slice %222 {offsets = [0, 0, 16], sizes = [2, 8, 8], strides = [1, 1, 1]} : vector<2x8x32xf32> to vector<2x8x8xf32>
    %270 = vector.extract_strided_slice %224 {offsets = [0, 0, 16], sizes = [2, 8, 8], strides = [1, 1, 1]} : vector<2x8x32xf32> to vector<2x8x8xf32>
    "tpu.trace_start"() <{level = 10 : i32, message = "bqd,bkd->bqk"}> : () -> ()
    %cst_110 = arith.constant dense<0.000000e+00> : vector<2x8x8xf32>
    %271 = tpu.matmul %268, %269, %cst_110 {dimension_numbers = #tpu.dot_dimension_numbers<[2], [2], [1], [1], [0, 0, 0, 1, 1, 1], [0], [0]>} : vector<2x8x8xf32>, vector<2x8x8xf32>, vector<2x8x8xf32> -> vector<2x8x8xf32>
    "tpu.trace_stop"() : () -> ()
    %cst_111 = arith.constant 0.353553385 : f32
    %272 = vector.broadcast %cst_111 : f32 to vector<2x8x8xf32>
    %273 = arith.mulf %271, %272 : vector<2x8x8xf32>
    %cst_112 = arith.constant dense<0xFF800000> : vector<2x8xf32>
    %274 = vector.multi_reduction <maximumf>, %273, %cst_112 [2] : vector<2x8x8xf32> to vector<2x8xf32>
    %275 = vector.shape_cast %274 : vector<2x8xf32> to vector<2x8x1xf32>
    %276 = vector.broadcast %275 : vector<2x8x1xf32> to vector<2x8x8xf32>
    %277 = arith.subf %273, %276 : vector<2x8x8xf32>
    %278 = math.exp %277 : vector<2x8x8xf32>
    %cst_113 = arith.constant dense<0.000000e+00> : vector<2x8xf32>
    %279 = vector.multi_reduction <add>, %278, %cst_113 [2] : vector<2x8x8xf32> to vector<2x8xf32>
    %280 = vector.shape_cast %279 : vector<2x8xf32> to vector<2x8x1xf32>
    %281 = tpu.reciprocal %280 {approx = true} : vector<2x8x1xf32> -> vector<2x8x1xf32>
    %282 = vector.broadcast %281 : vector<2x8x1xf32> to vector<2x8x8xf32>
    %283 = arith.mulf %278, %282 : vector<2x8x8xf32>
    "tpu.trace_start"() <{level = 10 : i32, message = "bqk,bkd->bqd"}> : () -> ()
    %cst_114 = arith.constant dense<0.000000e+00> : vector<2x8x8xf32>
    %284 = tpu.matmul %283, %270, %cst_114 {dimension_numbers = #tpu.dot_dimension_numbers<[2], [1], [1], [2], [0, 0, 0, 1, 1, 2], [0], [0]>} : vector<2x8x8xf32>, vector<2x8x8xf32>, vector<2x8x8xf32> -> vector<2x8x8xf32>
    "tpu.trace_stop"() : () -> ()
    %285 = vector.shape_cast %284 : vector<2x8x8xf32> to vector<16x8xf32>
    %286 = vector.extract_strided_slice %213 {offsets = [16, 0], sizes = [8, 32], strides = [1, 1]} : vector<32x32xf32> to vector<8x32xf32>
    %cst_115 = arith.constant dense<0.000000e+00> : vector<16x32xf32>
    %287 = tpu.matmul %285, %286, %cst_115 {dimension_numbers = #tpu.dot_dimension_numbers<[1], [0], [0], [1], [0, 0, 1, 1], [], []>} : vector<16x8xf32>, vector<8x32xf32>, vector<16x32xf32> -> vector<16x32xf32>
    %288 = arith.addf %267, %287 : vector<16x32xf32>
    %289 = vector.extract_strided_slice %220 {offsets = [0, 0, 24], sizes = [2, 8, 8], strides = [1, 1, 1]} : vector<2x8x32xf32> to vector<2x8x8xf32>
    %290 = vector.extract_strided_slice %222 {offsets = [0, 0, 24], sizes = [2, 8, 8], strides = [1, 1, 1]} : vector<2x8x32xf32> to vector<2x8x8xf32>
    %291 = vector.extract_strided_slice %224 {offsets = [0, 0, 24], sizes = [2, 8, 8], strides = [1, 1, 1]} : vector<2x8x32xf32> to vector<2x8x8xf32>
    "tpu.trace_start"() <{level = 10 : i32, message = "bqd,bkd->bqk"}> : () -> ()
    %cst_116 = arith.constant dense<0.000000e+00> : vector<2x8x8xf32>
    %292 = tpu.matmul %289, %290, %cst_116 {dimension_numbers = #tpu.dot_dimension_numbers<[2], [2], [1], [1], [0, 0, 0, 1, 1, 1], [0], [0]>} : vector<2x8x8xf32>, vector<2x8x8xf32>, vector<2x8x8xf32> -> vector<2x8x8xf32>
    "tpu.trace_stop"() : () -> ()
    %cst_117 = arith.constant 0.353553385 : f32
    %293 = vector.broadcast %cst_117 : f32 to vector<2x8x8xf32>
    %294 = arith.mulf %292, %293 : vector<2x8x8xf32>
    %cst_118 = arith.constant dense<0xFF800000> : vector<2x8xf32>
    %295 = vector.multi_reduction <maximumf>, %294, %cst_118 [2] : vector<2x8x8xf32> to vector<2x8xf32>
    %296 = vector.shape_cast %295 : vector<2x8xf32> to vector<2x8x1xf32>
    %297 = vector.broadcast %296 : vector<2x8x1xf32> to vector<2x8x8xf32>
    %298 = arith.subf %294, %297 : vector<2x8x8xf32>
    %299 = math.exp %298 : vector<2x8x8xf32>
    %cst_119 = arith.constant dense<0.000000e+00> : vector<2x8xf32>
    %300 = vector.multi_reduction <add>, %299, %cst_119 [2] : vector<2x8x8xf32> to vector<2x8xf32>
    %301 = vector.shape_cast %300 : vector<2x8xf32> to vector<2x8x1xf32>
    %302 = tpu.reciprocal %301 {approx = true} : vector<2x8x1xf32> -> vector<2x8x1xf32>
    %303 = vector.broadcast %302 : vector<2x8x1xf32> to vector<2x8x8xf32>
    %304 = arith.mulf %299, %303 : vector<2x8x8xf32>
    "tpu.trace_start"() <{level = 10 : i32, message = "bqk,bkd->bqd"}> : () -> ()
    %cst_120 = arith.constant dense<0.000000e+00> : vector<2x8x8xf32>
    %305 = tpu.matmul %304, %291, %cst_120 {dimension_numbers = #tpu.dot_dimension_numbers<[2], [1], [1], [2], [0, 0, 0, 1, 1, 2], [0], [0]>} : vector<2x8x8xf32>, vector<2x8x8xf32>, vector<2x8x8xf32> -> vector<2x8x8xf32>
    "tpu.trace_stop"() : () -> ()
    %306 = vector.shape_cast %305 : vector<2x8x8xf32> to vector<16x8xf32>
    %307 = vector.extract_strided_slice %213 {offsets = [24, 0], sizes = [8, 32], strides = [1, 1]} : vector<32x32xf32> to vector<8x32xf32>
    %cst_121 = arith.constant dense<0.000000e+00> : vector<16x32xf32>
    %308 = tpu.matmul %306, %307, %cst_121 {dimension_numbers = #tpu.dot_dimension_numbers<[1], [0], [0], [1], [0, 0, 1, 1], [], []>} : vector<16x8xf32>, vector<8x32xf32>, vector<16x32xf32> -> vector<16x32xf32>
    %309 = arith.addf %288, %308 : vector<16x32xf32>
    %310 = arith.addf %207, %309 : vector<16x32xf32>
    %c1_122 = arith.constant 1 : index
    %c0_123 = arith.constant 0 : index
    %c0_124 = arith.constant 0 : index
    %311 = vector.load %arg7[%c1_122, %c0_123, %c0_124] : memref<2x1x32xf32, #tpu.memory_space<vmem>>, vector<1x1x32xf32>
    %312 = vector.shape_cast %311 : vector<1x1x32xf32> to vector<1x32xf32>
    %c1_125 = arith.constant 1 : index
    %c0_126 = arith.constant 0 : index
    %c0_127 = arith.constant 0 : index
    %313 = vector.load %arg8[%c1_125, %c0_126, %c0_127] : memref<2x1x32xf32, #tpu.memory_space<vmem>>, vector<1x1x32xf32>
    %314 = vector.shape_cast %313 : vector<1x1x32xf32> to vector<1x32xf32>
    %cst_128 = arith.constant dense<0.000000e+00> : vector<16xf32>
    %315 = vector.multi_reduction <add>, %310, %cst_128 [1] : vector<16x32xf32> to vector<16xf32>
    %316 = vector.shape_cast %315 : vector<16xf32> to vector<16x1xf32>
    %cst_129 = arith.constant 3.200000e+01 : f32
    %317 = vector.broadcast %cst_129 : f32 to vector<16x1xf32>
    %318 = arith.divf %316, %317 : vector<16x1xf32>
    %319 = vector.broadcast %318 : vector<16x1xf32> to vector<16x32xf32>
    %320 = arith.subf %310, %319 : vector<16x32xf32>
    %321 = arith.mulf %320, %320 : vector<16x32xf32>
    %cst_130 = arith.constant dense<0.000000e+00> : vector<16xf32>
    %322 = vector.multi_reduction <add>, %321, %cst_130 [1] : vector<16x32xf32> to vector<16xf32>
    %323 = vector.shape_cast %322 : vector<16xf32> to vector<16x1xf32>
    %cst_131 = arith.constant 3.200000e+01 : f32
    %324 = vector.broadcast %cst_131 : f32 to vector<16x1xf32>
    %325 = arith.divf %323, %324 : vector<16x1xf32>
    %326 = vector.broadcast %318 : vector<16x1xf32> to vector<16x32xf32>
    %327 = arith.subf %310, %326 : vector<16x32xf32>
    %cst_132 = arith.constant 9.99999996E-13 : f32
    %328 = vector.broadcast %cst_132 : f32 to vector<16x1xf32>
    %329 = arith.addf %325, %328 : vector<16x1xf32>
    %330 = math.rsqrt %329 : vector<16x1xf32>
    %331 = vector.broadcast %330 : vector<16x1xf32> to vector<16x32xf32>
    %332 = arith.mulf %327, %331 : vector<16x32xf32>
    %333 = vector.broadcast %312 : vector<1x32xf32> to vector<16x32xf32>
    %334 = arith.mulf %332, %333 : vector<16x32xf32>
    %335 = vector.broadcast %314 : vector<1x32xf32> to vector<16x32xf32>
    %336 = arith.addf %334, %335 : vector<16x32xf32>
    %c1_133 = arith.constant 1 : index
    %c0_134 = arith.constant 0 : index
    %c0_135 = arith.constant 0 : index
    %337 = vector.load %arg9[%c1_133, %c0_134, %c0_135] : memref<2x32x64xf32, #tpu.memory_space<vmem>>, vector<1x32x64xf32>
    %338 = vector.shape_cast %337 : vector<1x32x64xf32> to vector<32x64xf32>
    %cst_136 = arith.constant dense<0.000000e+00> : vector<16x64xf32>
    %339 = tpu.matmul %336, %338, %cst_136 {dimension_numbers = #tpu.dot_dimension_numbers<[1], [0], [0], [1], [0, 0, 1, 1], [], []>} : vector<16x32xf32>, vector<32x64xf32>, vector<16x64xf32> -> vector<16x64xf32>
    %c1_137 = arith.constant 1 : index
    %c0_138 = arith.constant 0 : index
    %c0_139 = arith.constant 0 : index
    %340 = vector.load %arg10[%c1_137, %c0_138, %c0_139] : memref<2x1x64xf32, #tpu.memory_space<vmem>>, vector<1x1x64xf32>
    %341 = vector.shape_cast %340 : vector<1x1x64xf32> to vector<1x64xf32>
    %342 = vector.broadcast %341 : vector<1x64xf32> to vector<16x64xf32>
    %343 = arith.addf %339, %342 : vector<16x64xf32>
    %cst_140 = arith.constant 5.000000e-01 : f32
    %344 = vector.broadcast %cst_140 : f32 to vector<16x64xf32>
    %345 = arith.mulf %344, %343 : vector<16x64xf32>
    %cst_141 = arith.constant 4.471500e-02 : f32
    %346 = vector.broadcast %cst_141 : f32 to vector<16x64xf32>
    %347 = arith.mulf %346, %343 : vector<16x64xf32>
    %348 = arith.mulf %347, %343 : vector<16x64xf32>
    %349 = arith.mulf %348, %343 : vector<16x64xf32>
    %350 = arith.addf %343, %349 : vector<16x64xf32>
    %cst_142 = arith.constant 0.797884583 : f32
    %351 = vector.broadcast %cst_142 : f32 to vector<16x64xf32>
    %352 = arith.mulf %351, %350 : vector<16x64xf32>
    %353 = math.tanh %352 : vector<16x64xf32>
    %cst_143 = arith.constant 1.000000e+00 : f32
    %354 = vector.broadcast %cst_143 : f32 to vector<16x64xf32>
    %355 = arith.addf %354, %353 : vector<16x64xf32>
    %356 = arith.mulf %345, %355 : vector<16x64xf32>
    %c1_144 = arith.constant 1 : index
    %c0_145 = arith.constant 0 : index
    %c0_146 = arith.constant 0 : index
    %357 = vector.load %arg11[%c1_144, %c0_145, %c0_146] : memref<2x64x32xf32, #tpu.memory_space<vmem>>, vector<1x64x32xf32>
    %358 = vector.shape_cast %357 : vector<1x64x32xf32> to vector<64x32xf32>
    %cst_147 = arith.constant dense<0.000000e+00> : vector<16x32xf32>
    %359 = tpu.matmul %356, %358, %cst_147 {dimension_numbers = #tpu.dot_dimension_numbers<[1], [0], [0], [1], [0, 0, 1, 1], [], []>} : vector<16x64xf32>, vector<64x32xf32>, vector<16x32xf32> -> vector<16x32xf32>
    %c1_148 = arith.constant 1 : index
    %c0_149 = arith.constant 0 : index
    %c0_150 = arith.constant 0 : index
    %360 = vector.load %arg12[%c1_148, %c0_149, %c0_150] : memref<2x1x32xf32, #tpu.memory_space<vmem>>, vector<1x1x32xf32>
    %361 = vector.shape_cast %360 : vector<1x1x32xf32> to vector<1x32xf32>
    %362 = vector.broadcast %361 : vector<1x32xf32> to vector<16x32xf32>
    %363 = arith.addf %359, %362 : vector<16x32xf32>
    %364 = arith.addf %336, %363 : vector<16x32xf32>
    %c1_151 = arith.constant 1 : index
    %c0_152 = arith.constant 0 : index
    %c0_153 = arith.constant 0 : index
    %365 = vector.load %arg13[%c1_151, %c0_152, %c0_153] : memref<2x1x32xf32, #tpu.memory_space<vmem>>, vector<1x1x32xf32>
    %366 = vector.shape_cast %365 : vector<1x1x32xf32> to vector<1x32xf32>
    %c1_154 = arith.constant 1 : index
    %c0_155 = arith.constant 0 : index
    %c0_156 = arith.constant 0 : index
    %367 = vector.load %arg14[%c1_154, %c0_155, %c0_156] : memref<2x1x32xf32, #tpu.memory_space<vmem>>, vector<1x1x32xf32>
    %368 = vector.shape_cast %367 : vector<1x1x32xf32> to vector<1x32xf32>
    %cst_157 = arith.constant dense<0.000000e+00> : vector<16xf32>
    %369 = vector.multi_reduction <add>, %364, %cst_157 [1] : vector<16x32xf32> to vector<16xf32>
    %370 = vector.shape_cast %369 : vector<16xf32> to vector<16x1xf32>
    %cst_158 = arith.constant 3.200000e+01 : f32
    %371 = vector.broadcast %cst_158 : f32 to vector<16x1xf32>
    %372 = arith.divf %370, %371 : vector<16x1xf32>
    %373 = vector.broadcast %372 : vector<16x1xf32> to vector<16x32xf32>
    %374 = arith.subf %364, %373 : vector<16x32xf32>
    %375 = arith.mulf %374, %374 : vector<16x32xf32>
    %cst_159 = arith.constant dense<0.000000e+00> : vector<16xf32>
    %376 = vector.multi_reduction <add>, %375, %cst_159 [1] : vector<16x32xf32> to vector<16xf32>
    %377 = vector.shape_cast %376 : vector<16xf32> to vector<16x1xf32>
    %cst_160 = arith.constant 3.200000e+01 : f32
    %378 = vector.broadcast %cst_160 : f32 to vector<16x1xf32>
    %379 = arith.divf %377, %378 : vector<16x1xf32>
    %380 = vector.broadcast %372 : vector<16x1xf32> to vector<16x32xf32>
    %381 = arith.subf %364, %380 : vector<16x32xf32>
    %cst_161 = arith.constant 9.99999996E-13 : f32
    %382 = vector.broadcast %cst_161 : f32 to vector<16x1xf32>
    %383 = arith.addf %379, %382 : vector<16x1xf32>
    %384 = math.rsqrt %383 : vector<16x1xf32>
    %385 = vector.broadcast %384 : vector<16x1xf32> to vector<16x32xf32>
    %386 = arith.mulf %381, %385 : vector<16x32xf32>
    %387 = vector.broadcast %366 : vector<1x32xf32> to vector<16x32xf32>
    %388 = arith.mulf %386, %387 : vector<16x32xf32>
    %389 = vector.broadcast %368 : vector<1x32xf32> to vector<16x32xf32>
    %390 = arith.addf %388, %389 : vector<16x32xf32>
    %c0_162 = arith.constant 0 : index
    %c0_163 = arith.constant 0 : index
    %391 = vector.load %arg15[%c0_162, %c0_163] : memref<32x128xf32, #tpu.memory_space<vmem>>, vector<32x128xf32>
    %cst_164 = arith.constant dense<0.000000e+00> : vector<16x128xf32>
    %392 = tpu.matmul %390, %391, %cst_164 {dimension_numbers = #tpu.dot_dimension_numbers<[1], [0], [0], [1], [0, 0, 1, 1], [], []>} : vector<16x32xf32>, vector<32x128xf32>, vector<16x128xf32> -> vector<16x128xf32>
    %c0_165 = arith.constant 0 : index
    %c0_166 = arith.constant 0 : index
    %393 = vector.load %arg16[%c0_165, %c0_166] : memref<1x128xf32, #tpu.memory_space<vmem>>, vector<1x128xf32>
    %394 = vector.broadcast %393 : vector<1x128xf32> to vector<16x128xf32>
    %395 = arith.addf %392, %394 : vector<16x128xf32>
    %c0_167 = arith.constant 0 : index
    %c0_168 = arith.constant 0 : index
    %396 = vector.load %arg17[%c0_167, %c0_168] : memref<16x128xf32, #tpu.memory_space<vmem>>, vector<16x128xf32>
    tpu.vector_store %arg17[%c0_167, %c0_168], %395 {strides = array<i32>} : memref<16x128xf32, #tpu.memory_space<vmem>>, vector<16x128xf32>,
    return
  }
}

</mosaic_0001>

<bundles_post_ra>
// kernel: transformer_classifier_forward.1
= control target key start
LH: loop header
LB: loop body
LE: loop exit
PB: predicated region body
PF: predicated region fallthrough
CT: control target
= control target key end

     0   :  { %vm60_vm0 = vcmask 261120   ;;  %v5083_v36 = vmov 0.0   ;;  %vm5084_vm1 = vmmov 0   ;;  %s5085_s27 = smov 96   ;;  %vm204_vm2 = vcmask 64512   ;;  %s5086_s28 = smov 64   ;;  %s5733_s0 = inlined_call_operand.vmem [shape: f32[16,32], index: 0, kind: input, shape index: {}]   ;;  %s5734_s3 = inlined_call_operand.vmem [shape: f32[2,32,96], index: 3, kind: input, shape index: {}]   ;;  %s5735_s1 = inlined_call_operand.vmem [shape: f32[1,32], index: 1, kind: input, shape index: {}]   ;;  %s5736_s2 = inlined_call_operand.vmem [shape: f32[1,32], index: 2, kind: input, shape index: {}]   ;;  %s5737_s4 = inlined_call_operand.vmem [shape: f32[2,1,96], index: 4, kind: input, shape index: {}]   ;;  %s5738_s5 = inlined_call_operand.vmem [shape: f32[2,32,32], index: 5, kind: input, shape index: {}]   ;;  %s5739_s6 = inlined_call_operand.vmem [shape: f32[2,1,32], index: 6, kind: input, shape index: {}]   ;;  %s5740_s9 = inlined_call_operand.vmem [shape: f32[2,32,64], index: 9, kind: input, shape index: {}]   ;;  %s5741_s7 = inlined_call_operand.vmem [shape: f32[2,1,32], index: 7, kind: input, shape index: {}]   ;;  %s5742_s8 = inlined_call_operand.vmem [shape: f32[2,1,32], index: 8, kind: input, shape index: {}]   ;;  %s5743_s11 = inlined_call_operand.vmem [shape: f32[2,64,32], index: 11, kind: input, shape index: {}]   ;;  %s5744_s10 = inlined_call_operand.vmem [shape: f32[2,1,64], index: 10, kind: input, shape index: {}]   ;;  %s5745_s12 = inlined_call_operand.vmem [shape: f32[2,1,32], index: 12, kind: input, shape index: {}]   ;;  %s5746_s13 = inlined_call_operand.vmem [shape: f32[2,1,32], index: 13, kind: input, shape index: {}]   ;;  %s5747_s14 = inlined_call_operand.vmem [shape: f32[2,1,32], index: 14, kind: input, shape index: {}]   ;;  %s5748_s15 = inlined_call_operand.vmem [shape: f32[32,128], index: 15, kind: input, shape index: {}]   ;;  %s5749_s16 = inlined_call_operand.vmem [shape: f32[1,128], index: 16, kind: input, shape index: {}]   ;;  %s5750_s17 = inlined_call_operand.vmem [shape: f32[16,128], index: 17, kind: output, shape index: {}]  }
   0x1   :  { %5763 = sst [smem:[#allocation2_spill]] %s5733_s0  ;;  %v4334_v27 = vld [vmem:[%s5735_s1] ss:$0 sm:$0xff]  ;;  %4608 = vmatprep.subr.mxu1 %v5083_v36  ;;  %4610 = vmatprep.mubr.msk.f32.mxu1 %vm5084_vm1, %v5083_v36  ;;  %s5087_s29 = smov 88   ;;  %vm2037_vm3 = vcmask 523264  }
   0x2   :  { %5764 = sst [smem:[#allocation3_spill]] %s5734_s3  ;;  %s5765_s26 = sld [smem:[#allocation2_spill]]  ;;  %v4335_v29 = vld [vmem:[%s5736_s2] ss:$0 sm:$0xff] }
   0x3   :  { %s5766_s30 = sld [smem:[#allocation3_spill]]  ;;  %v4336_v37 = vld [vmem:[%s5737_s4] ss:$0 sm:$0xff]  ;;  %s5088_s0 = smov 120  }
   0x4   :  { %s5089_s18 = smov 80   ;;  %v109_v62 = vld [vmem:[%s5738_s5] sm:$0xff]  ;;  %s5090_s20 = smov 56  }
   0x5   :  { %s5761_s21 = smov 112   ;;  %s5759_s22 = smov 48  }
   0x6   :  { %s5757_s23 = smov 72   ;;  %s5755_s24 = smov 104  }
   0x7   :  { %s5753_s19 = smov 40  }
   0x8   :  { %v56_v0 = vld [vmem:[%s5765_s26] sm:$0xff]  ;;  %v57_v1 = vld [vmem:[%s5765_s26 + $0x8] sm:$0xff] }
   0x9   :  { %v61_v2 = vsel %vm60_vm0, %v56_v0, 0.0  ;;  %v64_v3 = vsel %vm60_vm0, %v57_v1, 0.0  ;;  %v104_v14 = vld [vmem:[%s5766_s30] sm:$0xff]  ;;  %v105_v15 = vld [vmem:[%s5766_s30 + $0x8] sm:$0xff]  ;;  %v106_v16 = vld [vmem:[%s5766_s30 + $0x10] sm:$0xff] }
   0xa   :  { %62 = vadd.xlane.f32.xlu0 %v61_v2  ;;  %v4890_v17 = vpack.c.bf16 %v105_v15, %v104_v14  ;;  %v107_v18 = vld [vmem:[%s5766_s30 + $0x18] sm:$0xff] }
   0xb   :  { %v4894_v19 = vpack.c.bf16 %v107_v18, %v106_v16 }
   0xc   :  { %4891 = vmatprep.subr.bf16.mxu0 %v4890_v17 }
   0xd   :  { %4893 = vmatpush3.bf16.msra.mxu0 %v4890_v17 }
   0xe   :  { %65 = vadd.xlane.f32.xlu0 %v64_v3  ;;  %4895 = vmatprep.subr.bf16.mxu0 %v4894_v19 }
  0x11   :  { %4897 = vmatpush3.bf16.msra.mxu0 %v4894_v19 }
  0x12   :  { %4628 = vmatprep.subr.mxu0 %v109_v62 }
  0x97   :  { %v63_v4 = vpop.xlane.xlu0 %62 }
  0x98   :  { %v68_v5 = vmul.f32 0.03125, %v63_v4 }
  0x9a   :  { %v70_v6 = vsub.f32 %v56_v0, %v68_v5 }
  0x9b   :  { %v66_v7 = vpop.xlane.xlu0 %65 }
  0x9c   :  { %v69_v8 = vmul.f32 0.03125, %v66_v7  ;;  %v72_v9 = vmul.f32 %v70_v6, %v70_v6 }
  0x9e   :  { %v71_v10 = vsub.f32 %v57_v1, %v69_v8  ;;  %v74_v11 = vsel %vm60_vm0, %v72_v9, 0.0 }
  0x9f   :  { %75 = vadd.xlane.f32.xlu1 %v74_v11 }
  0xa0   :  { %v73_v12 = vmul.f32 %v71_v10, %v71_v10 }
  0xa2   :  { %v77_v13 = vsel %vm60_vm0, %v73_v12, 0.0 }
  0xa3   :  { %78 = vadd.xlane.f32.xlu1 %v77_v13 }
 0x12c   :  { %v76_v20 = vpop.xlane.xlu1 %75 }
 0x12d   :  { %v80_v21 = vmul.f32 0.03125, %v76_v20 }
 0x12f   :  { %v82_v22 = vadd.f32 1e-12, %v80_v21 }
 0x130   :  { %v79_v23 = vpop.xlane.xlu1 %78 }
 0x131   :  { %4991 = vrsqrt.f32 %v82_v22  ;;  %v81_v24 = vmul.f32 0.03125, %v79_v23 }
 0x133   :  { %v83_v25 = vadd.f32 1e-12, %v81_v24 }
 0x135   :  { %4993 = vrsqrt.f32 %v83_v25 }
 0x13b   :  { %v4992_v26 = vpop.eup %4991 }
 0x13c   :  { %v86_v28 = vmul.f32 %v4992_v26, %v70_v6 }
 0x13e   :  { %v94_v30 = vmul.f32 %v4334_v27, %v86_v28 }
 0x13f   :  { %v4994_v31 = vpop.eup %4993 }
 0x140   :  { %v87_v32 = vmul.f32 %v4994_v31, %v71_v10  ;;  %v5214_v33 = vadd.f32 %v4335_v29, %v94_v30 }
 0x142   :  { %v95_v34 = vmul.f32 %v4334_v27, %v87_v32  ;;  %4605 = vmatprep.mubr.msk.f32.mxu0 %vm60_vm0, %v5214_v33 }
 0x144   :  { %v5218_v35 = vadd.f32 %v4335_v29, %v95_v34 }
 0x146   :  { %4606 = vmatmul.mubr.msk.f32.vlgmr.msra.gmra.mrb[0].mxu0 %vm60_vm0, %v5218_v35 }
 0x147   :  { %4629 = vmatpush3.msra.mxu0 %v109_v62 }
 0x148   :  { %4638 = vmatprep.subr.mxu0 %v5083_v36 }
 0x219   :  { %v4607_v38 = vpop.f32.mrb[0].mxu0 }
 0x21a   :  { %v5228_v39 = vadd.f32 %v4607_v38, %v4336_v37  ;;  %v192_v40 = vpop.f32.mrb[1].mxu0 }
 0x21b   :  { %v5230_v41 = vadd.f32 %v4336_v37, %v192_v40 }
 0x21c   :  { %280 = vrot.lane.b32.xlu1 %v5228_v39, %s5085_s27 }
 0x21d   :  { %202 = vrot.lane.b32.xlu0 %v5230_v41, %s5085_s27 }
 0x28e   :  { %v281_v43 = vpop.permute.xlu1 %280 }
 0x28f   :  { %v203_v42 = vpop.permute.xlu0 %202 }
 0x290   :  { %4609 = vmatpush3.xpose.msk.msra.mxu1 %vm204_vm2, %v203_v42 }
 0x291   :  { %4613 = vmatprep.subr.mxu1 %v5083_v36 }
 0x293   :  { %4611 = vmatmul.mubr.msk.f32.vlgmr.msra.gmra.mrb[0].mxu1 %vm204_vm2, %v5230_v41 }
 0x294   :  { %4614 = vmatpush3.xpose.msk.msra.mxu1 %vm204_vm2, %v281_v43  ;;  %4615 = vmatprep.mubr.msk.f32.mxu1 %vm5084_vm1, %v5083_v36 }
 0x295   :  { %4618 = vmatprep.subr.mxu1 %v5083_v36 }
 0x297   :  { %4616 = vmatmul.mubr.msk.f32.vlgmr.msra.gmra.mrb[2].mxu1 %vm204_vm2, %v5228_v39 }
 0x298   :  { %4620 = vmatprep.mubr.msk.f32.mxu1 %vm5084_vm1, %v5083_v36 }
 0x366   :  { %v275_v44 = vpop.f32.mrb[0].mxu1 }
 0x367   :  { %v356_v45 = vmul.f32 0.35355338, %v275_v44  ;;  %v4612_v46 = vpop.f32.mrb[1].mxu1 }
 0x369   :  { %v358_v47 = vsel %vm204_vm2, %v356_v45, -inf }
 0x36a   :  { %359 = vmax.xlane.f32.xlu1 %v358_v47  ;;  %v352_v48 = vpop.f32.mrb[2].mxu1 }
 0x36b   :  { %v357_v49 = vmul.f32 0.35355338, %v352_v48  ;;  %v4617_v50 = vpop.f32.mrb[3].mxu1 }
 0x36d   :  { %v361_v51 = vsel %vm204_vm2, %v357_v49, -inf }
 0x36e   :  { %362 = vmax.xlane.f32.xlu0 %v361_v51 }
 0x3f7   :  { %v360_v52 = vpop.xlane.xlu1 %359 }
 0x3f8   :  { %v364_v53 = vsub.f32 %v356_v45, %v360_v52 }
 0x3fa   :  { %v366_v54 = vmul.f32 1.442695, %v364_v53 }
 0x3fb   :  { %v363_v55 = vpop.xlane.xlu0 %362 }
 0x3fc   :  { %4995 = vpow2.f32 %v366_v54  ;;  %v365_v56 = vsub.f32 %v357_v49, %v363_v55 }
 0x3fe   :  { %v368_v57 = vmul.f32 1.442695, %v365_v56 }
 0x400   :  { %4997 = vpow2.f32 %v368_v57 }
 0x406   :  { %v4996_v58 = vpop.eup %4995 }
 0x407   :  { %v370_v59 = vsel %vm204_vm2, %v4996_v58, 0.0 }
 0x408   :  { %371 = vadd.xlane.f32.xlu0 %v370_v59 }
 0x40a   :  { %v4998_v60 = vpop.eup %4997 }
 0x40b   :  { %v373_v61 = vsel %vm204_vm2, %v4998_v60, 0.0 }
 0x40c   :  { %374 = vadd.xlane.f32.xlu1 %v373_v61  ;;  %v110_v61 = vld [vmem:[%s5738_s5 + $0x8] sm:$0xff] }
 0x41d   :  { %456 = vrot.lane.b32.xlu1 %v5228_v39, %s5086_s28 }
 0x41e   :  { %380 = vrot.lane.b32.xlu0 %v5230_v41, %s5086_s28 }
 0x421   :  { %623 = vrot.lane.b32.xlu1 %v5230_v41, %s5087_s29 }
 0x422   :  { %701 = vrot.lane.b32.xlu0 %v5228_v39, %s5087_s29 }
 0x425   :  { %621 = vrot.lane.b32.xlu1 %v5230_v41, %s5088_s0 }
 0x429   :  { %699 = vrot.lane.b32.xlu1 %v5228_v39, %s5088_s0 }
 0x42d   :  { %1038 = vrot.lane.b32.xlu1 %v5230_v41, %s5089_s18 }
 0x495   :  { %v372_v63 = vpop.xlane.xlu0 %371 }
 0x496   :  { %4999 = vrcp.f32 %v372_v63 }
 0x499   :  { %v375_v0 = vpop.xlane.xlu1 %374  ;;  %v381_v1 = vpop.permute.xlu0 %380 }
 0x49a   :  { %5001 = vrcp.f32 %v375_v0  ;;  %4619 = vmatpush3.msra.mxu1 %v381_v1 }
 0x49b   :  { %4623 = vmatprep.subr.mxu1 %v5083_v36 }
 0x49d   :  { %v457_v4 = vpop.permute.xlu1 %456  ;;  %v702_v12 = vpop.permute.xlu0 %701 }
 0x4a0   :  { %v5000_v2 = vpop.eup %4999 }
 0x4a1   :  { %v378_v3 = vmul.f32 %v5000_v2, %v4996_v58  ;;  %v624_v7 = vpop.permute.xlu1 %623 }
 0x4a3   :  { %4621 = vmatmul.mubr.msk.f32.vlgmr.msra.gmra.mrb[4].mxu1 %vm204_vm2, %v378_v3 }
 0x4a4   :  { %v5002_v5 = vpop.eup %5001  ;;  %4624 = vmatpush3.msra.mxu1 %v457_v4  ;;  %4625 = vmatprep.mubr.msk.f32.mxu1 %vm5084_vm1, %v5083_v36 }
 0x4a5   :  { %v379_v6 = vmul.f32 %v5002_v5, %v4998_v60  ;;  %4633 = vmatprep.subr.mxu1 %v5083_v36  ;;  %v622_v8 = vpop.permute.xlu1 %621 }
 0x4a7   :  { %4626 = vmatmul.mubr.msk.f32.vlgmr.msra.gmra.mrb[6].mxu1 %vm204_vm2, %v379_v6 }
 0x4a8   :  { %4635 = vmatprep.mubr.msk.f32.mxu1 %vm5084_vm1, %v5083_v36 }
 0x4a9   :  { %v700_v14 = vpop.permute.xlu1 %699 }
 0x4ab   :  { %4634 = vmatpush3.xpose.msk.msra.mxu1 %vm204_vm2, %v624_v7 }
 0x4ac   :  { %4643 = vmatprep.subr.mxu1 %v5083_v36 }
 0x4ad   :  { %v1039_v29 = vpop.permute.xlu1 %1038 }
 0x4ae   :  { %4636 = vmatmul.mubr.msk.f32.vlgmr.msra.gmra.mrb[8].mxu1 %vm204_vm2, %v622_v8 }
 0x4af   :  { %4645 = vmatprep.mubr.msk.f32.mxu1 %vm5084_vm1, %v5083_v36 }
 0x576   :  { %v452_v9 = vpop.f32.mrb[4].mxu1 }
 0x577   :  { %v4622_v10 = vpop.f32.mrb[5].mxu1  ;;  %4630 = vmatprep.mubr.msk.f32.mxu0 %vm204_vm2, %v452_v9 }
 0x57a   :  { %v528_v11 = vpop.f32.mrb[6].mxu1 }
 0x57b   :  { %v4627_v13 = vpop.f32.mrb[7].mxu1  ;;  %4631 = vmatmul.mubr.msk.f32.vlgmr.msra.gmra.mrb[2].mxu0 %vm204_vm2, %v528_v11 }
 0x57c   :  { %4639 = vmatpush3.xpose.msk.msra.mxu0 %vm204_vm2, %v702_v12  ;;  %4640 = vmatprep.mubr.msk.f32.mxu0 %vm5084_vm1, %v5083_v36  ;;  %v111_v12 = vld [vmem:[%s5738_s5 + $0x10] sm:$0xff] }
 0x57d   :  { %4648 = vmatprep.subr.mxu0 %v5083_v36 }
 0x57f   :  { %4641 = vmatmul.mubr.msk.f32.vlgmr.msra.gmra.mrb[4].mxu0 %vm204_vm2, %v700_v14 }
 0x580   :  { %4650 = vmatprep.mubr.msk.f32.mxu0 %vm5084_vm1, %v5083_v36 }
 0x581   :  { %v695_v15 = vpop.f32.mrb[8].mxu1 }
 0x582   :  { %v777_v16 = vmul.f32 0.35355338, %v695_v15  ;;  %v4637_v17 = vpop.f32.mrb[9].mxu1 }
 0x584   :  { %v779_v18 = vsel %vm204_vm2, %v777_v16, -inf }
 0x585   :  { %780 = vmax.xlane.f32.xlu0 %v779_v18 }
 0x59b   :  { %801 = vrot.lane.b32.xlu0 %v5230_v41, %s5090_s20 }
 0x59f   :  { %1036 = vrot.lane.b32.xlu0 %v5230_v41, %s5761_s21 }
 0x5a3   :  { %1114 = vrot.lane.b32.xlu0 %v5228_v39, %s5761_s21  ;;  %s5771_s21 = smov 40  }
 0x612   :  { %v781_v19 = vpop.xlane.xlu0 %780 }
 0x613   :  { %v785_v20 = vsub.f32 %v777_v16, %v781_v19 }
 0x615   :  { %v787_v21 = vmul.f32 1.442695, %v785_v20 }
 0x616   :  { %v802_v22 = vpop.permute.xlu0 %801 }
 0x617   :  { %5003 = vpow2.f32 %v787_v21  ;;  %4644 = vmatpush3.msra.mxu1 %v802_v22 }
 0x618   :  { %4658 = vmatprep.subr.mxu1 %v5083_v36 }
 0x61a   :  { %v1037_v34 = vpop.permute.xlu0 %1036 }
 0x61e   :  { %v1115_v38 = vpop.permute.xlu0 %1114 }
 0x621   :  { %v5004_v23 = vpop.eup %5003 }
 0x622   :  { %v791_v24 = vsel %vm204_vm2, %v5004_v23, 0.0 }
 0x623   :  { %792 = vadd.xlane.f32.xlu1 %v791_v24 }
 0x634   :  { %1116 = vrot.lane.b32.xlu1 %v5228_v39, %s5089_s18 }
 0x652   :  { %v773_v25 = vpop.f32.mrb[4].mxu0 }
 0x653   :  { %v778_v26 = vmul.f32 0.35355338, %v773_v25  ;;  %v4642_v27 = vpop.f32.mrb[5].mxu0 }
 0x655   :  { %v782_v28 = vsel %vm204_vm2, %v778_v26, -inf }
 0x658   :  { %783 = vmax.xlane.f32.xlu1 %v782_v28 }
 0x6b0   :  { %v793_v30 = vpop.xlane.xlu1 %792 }
 0x6b1   :  { %5005 = vrcp.f32 %v793_v30 }
 0x6b4   :  { %v1117_v37 = vpop.permute.xlu1 %1116 }
 0x6bb   :  { %v5006_v31 = vpop.eup %5005 }
 0x6bc   :  { %v799_v32 = vmul.f32 %v5006_v31, %v5004_v23 }
 0x6be   :  { %4646 = vmatmul.mubr.msk.f32.vlgmr.msra.gmra.mrb[10].mxu1 %vm204_vm2, %v799_v32 }
 0x6bf   :  { %4659 = vmatpush3.xpose.msk.msra.mxu1 %vm204_vm2, %v1039_v29  ;;  %4660 = vmatprep.mubr.msk.f32.mxu1 %vm5084_vm1, %v5083_v36 }
 0x6c0   :  { %4663 = vmatprep.subr.mxu1 %v5083_v36 }
 0x6c2   :  { %4661 = vmatmul.mubr.msk.f32.vlgmr.msra.gmra.mrb[12].mxu1 %vm204_vm2, %v1037_v34 }
 0x6c3   :  { %4664 = vmatpush3.xpose.msk.msra.mxu1 %vm204_vm2, %v1117_v37  ;;  %4665 = vmatprep.mubr.msk.f32.mxu1 %vm5084_vm1, %v5083_v36 }
 0x6c4   :  { %4673 = vmatprep.subr.mxu1 %v5083_v36 }
 0x6c6   :  { %4666 = vmatmul.mubr.msk.f32.vlgmr.msra.gmra.mrb[14].mxu1 %vm204_vm2, %v1115_v38 }
 0x6c7   :  { %4675 = vmatprep.mubr.msk.f32.mxu1 %vm5084_vm1, %v5083_v36 }
 0x6e5   :  { %v784_v40 = vpop.xlane.xlu1 %783 }
 0x6e6   :  { %v786_v42 = vsub.f32 %v778_v26, %v784_v40 }
 0x6e8   :  { %v789_v43 = vmul.f32 1.442695, %v786_v42 }
 0x6ea   :  { %5007 = vpow2.f32 %v789_v43 }
 0x6f4   :  { %v5008_v44 = vpop.eup %5007 }
 0x6f5   :  { %v794_v45 = vsel %vm204_vm2, %v5008_v44, 0.0 }
 0x6f6   :  { %795 = vadd.xlane.f32.xlu0 %v794_v45 }
 0x70c   :  { %877 = vrot.lane.b32.xlu0 %v5228_v39, %s5090_s20 }
 0x710   :  { %1292 = vrot.lane.b32.xlu0 %v5228_v39, %s5759_s22 }
 0x714   :  { %1453 = vrot.lane.b32.xlu0 %v5230_v41, %s5757_s23 }
 0x718   :  { %1531 = vrot.lane.b32.xlu0 %v5228_v39, %s5757_s23 }
 0x71c   :  { %1451 = vrot.lane.b32.xlu0 %v5230_v41, %s5755_s24 }
 0x783   :  { %v796_v46 = vpop.xlane.xlu0 %795 }
 0x784   :  { %5009 = vrcp.f32 %v796_v46 }
 0x787   :  { %v878_v47 = vpop.permute.xlu0 %877 }
 0x788   :  { %4649 = vmatpush3.msra.mxu0 %v878_v47 }
 0x789   :  { %4653 = vmatprep.subr.mxu0 %v110_v61 }
 0x78b   :  { %v1293_v48 = vpop.permute.xlu0 %1292 }
 0x78c   :  { %4674 = vmatpush3.msra.mxu1 %v1293_v48 }
 0x78d   :  { %4683 = vmatprep.subr.mxu1 %v5083_v36 }
 0x78e   :  { %v5010_v49 = vpop.eup %5009 }
 0x78f   :  { %v800_v50 = vmul.f32 %v5010_v49, %v5008_v44  ;;  %v1454_v14 = vpop.permute.xlu0 %1453 }
 0x791   :  { %v873_v51 = vpop.f32.mrb[10].mxu1  ;;  %4651 = vmatmul.mubr.msk.f32.vlgmr.msra.gmra.mrb[6].mxu0 %vm204_vm2, %v800_v50 }
 0x792   :  { %v4647_v52 = vpop.f32.mrb[11].mxu1  ;;  %4655 = vmatprep.mubr.msk.f32.mxu0 %vm204_vm2, %v873_v51  ;;  %4654 = vmatpush3.msra.mxu0 %v110_v61 }
 0x793   :  { %4668 = vmatprep.subr.mxu0 %v5083_v36  ;;  %v1532_v18 = vpop.permute.xlu0 %1531 }
 0x795   :  { %v1110_v53 = vpop.f32.mrb[12].mxu1 }
 0x796   :  { %v1192_v54 = vmul.f32 0.35355338, %v1110_v53  ;;  %v4662_v55 = vpop.f32.mrb[13].mxu1 }
 0x797   :  { %v1452_v20 = vpop.permute.xlu0 %1451 }
 0x798   :  { %v1194_v56 = vsel %vm204_vm2, %v1192_v54, -inf }
 0x799   :  { %1195 = vmax.xlane.f32.xlu1 %v1194_v56  ;;  %v1188_v57 = vpop.f32.mrb[14].mxu1  ;;  %v112_v56 = vld [vmem:[%s5738_s5 + $0x18] sm:$0xff] }
 0x79a   :  { %v1193_v58 = vmul.f32 0.35355338, %v1188_v57  ;;  %v4667_v59 = vpop.f32.mrb[15].mxu1 }
 0x79c   :  { %v1197_v60 = vsel %vm204_vm2, %v1193_v58, -inf }
 0x79d   :  { %1198 = vmax.xlane.f32.xlu1 %v1197_v60  ;;  %v4347_v60 = vld [vmem:[%s5739_s6] ss:$0 sm:$0xff] }
 0x826   :  { %v1196_v62 = vpop.xlane.xlu1 %1195 }
 0x827   :  { %v1200_v63 = vsub.f32 %v1192_v54, %v1196_v62 }
 0x829   :  { %v1202_v0 = vmul.f32 1.442695, %v1200_v63 }
 0x82a   :  { %v1199_v1 = vpop.xlane.xlu1 %1198 }
 0x82b   :  { %5011 = vpow2.f32 %v1202_v0  ;;  %v1201_v2 = vsub.f32 %v1193_v58, %v1199_v1 }
 0x82d   :  { %v1204_v3 = vmul.f32 1.442695, %v1201_v2 }
 0x82f   :  { %5013 = vpow2.f32 %v1204_v3 }
 0x835   :  { %v5012_v4 = vpop.eup %5011 }
 0x836   :  { %v1206_v5 = vsel %vm204_vm2, %v5012_v4, 0.0 }
 0x837   :  { %1207 = vadd.xlane.f32.xlu1 %v1206_v5 }
 0x839   :  { %v5014_v6 = vpop.eup %5013 }
 0x83a   :  { %v1209_v7 = vsel %vm204_vm2, %v5014_v6, 0.0 }
 0x83b   :  { %1210 = vadd.xlane.f32.xlu1 %v1209_v7 }
 0x84c   :  { %1216 = vrot.lane.b32.xlu1 %v5230_v41, %s5759_s22 }
 0x850   :  { %1529 = vrot.lane.b32.xlu1 %v5228_v39, %s5755_s24 }
 0x864   :  { %v949_v8 = vpop.f32.mrb[6].mxu0 }
 0x865   :  { %v4652_v9 = vpop.f32.mrb[7].mxu0  ;;  %4656 = vmatmul.mubr.msk.f32.vlgmr.msra.gmra.mrb[2].mxu0 %vm204_vm2, %v949_v8 }
 0x866   :  { %4670 = vmatprep.mubr.msk.f32.mxu0 %vm5084_vm1, %v5083_v36 }
 0x8c4   :  { %v1208_v10 = vpop.xlane.xlu1 %1207 }
 0x8c5   :  { %5015 = vrcp.f32 %v1208_v10 }
 0x8c8   :  { %v1211_v11 = vpop.xlane.xlu1 %1210 }
 0x8c9   :  { %5017 = vrcp.f32 %v1211_v11 }
 0x8cc   :  { %v1217_v13 = vpop.permute.xlu1 %1216 }
 0x8cd   :  { %4669 = vmatpush3.msra.mxu0 %v1217_v13 }
 0x8ce   :  { %4678 = vmatprep.subr.mxu0 %v111_v12 }
 0x8cf   :  { %v5016_v15 = vpop.eup %5015 }
 0x8d0   :  { %v1214_v16 = vmul.f32 %v5016_v15, %v5012_v4  ;;  %v1530_v25 = vpop.permute.xlu1 %1529 }
 0x8d2   :  { %4671 = vmatmul.mubr.msk.f32.vlgmr.msra.gmra.mrb[8].mxu0 %vm204_vm2, %v1214_v16  ;;  %v1914_v16 = vld [vmem:[%s5740_s9 + $0x10] sm:$0xff] }
 0x8d3   :  { %v5018_v17 = vpop.eup %5017  ;;  %4679 = vmatpush3.msra.mxu0 %v111_v12 }
 0x8d4   :  { %v1215_v19 = vmul.f32 %v5018_v17, %v5014_v6  ;;  %4688 = vmatprep.subr.mxu0 %v5083_v36  ;;  %v1915_v17 = vld [vmem:[%s5740_s9 + $0x18] sm:$0xff] }
 0x8d6   :  { %4676 = vmatmul.mubr.msk.f32.vlgmr.msra.gmra.mrb[16].mxu1 %vm204_vm2, %v1215_v19 }
 0x8d7   :  { %4684 = vmatpush3.xpose.msk.msra.mxu1 %vm204_vm2, %v1454_v14  ;;  %4685 = vmatprep.mubr.msk.f32.mxu1 %vm5084_vm1, %v5083_v36  ;;  %v1913_v14 = vld [vmem:[%s5740_s9 + $0x8] sm:$0xff] }
 0x8d8   :  { %4693 = vmatprep.subr.mxu1 %v5083_v36 }
 0x8da   :  { %4686 = vmatmul.mubr.msk.f32.vlgmr.msra.gmra.mrb[18].mxu1 %vm204_vm2, %v1452_v20 }
 0x8db   :  { %4695 = vmatprep.mubr.msk.f32.mxu1 %vm5084_vm1, %v5083_v36 }
 0x9a5   :  { %v1288_v21 = vpop.f32.mrb[8].mxu0 }
 0x9a6   :  { %v4672_v22 = vpop.f32.mrb[9].mxu0  ;;  %4680 = vmatprep.mubr.msk.f32.mxu0 %vm204_vm2, %v1288_v21 }
 0x9a9   :  { %v1364_v23 = vpop.f32.mrb[16].mxu1 }
 0x9aa   :  { %v4677_v24 = vpop.f32.mrb[17].mxu1  ;;  %4681 = vmatmul.mubr.msk.f32.vlgmr.msra.gmra.mrb[2].mxu0 %vm204_vm2, %v1364_v23 }
 0x9ab   :  { %4689 = vmatpush3.xpose.msk.msra.mxu0 %vm204_vm2, %v1532_v18  ;;  %4690 = vmatprep.mubr.msk.f32.mxu0 %vm5084_vm1, %v5083_v36  ;;  %v4902_v18 = vpack.c.bf16 %v1915_v17, %v1914_v16 }
 0x9ac   :  { %4698 = vmatprep.subr.mxu0 %v5083_v36 }
 0x9ad   :  { %v1525_v26 = vpop.f32.mrb[18].mxu1 }
 0x9ae   :  { %v1607_v27 = vmul.f32 0.35355338, %v1525_v26  ;;  %v4687_v28 = vpop.f32.mrb[19].mxu1  ;;  %4691 = vmatmul.mubr.msk.f32.vlgmr.msra.gmra.mrb[10].mxu0 %vm204_vm2, %v1530_v25  ;;  %v4372_v26 = vld [vmem:[%s5741_s7] ss:$0 sm:$0xff] }
 0x9af   :  { %4700 = vmatprep.mubr.msk.f32.mxu0 %vm5084_vm1, %v5083_v36 }
 0x9b0   :  { %v1609_v29 = vsel %vm204_vm2, %v1607_v27, -inf }
 0x9b1   :  { %1610 = vmax.xlane.f32.xlu0 %v1609_v29 }
 0xa3e   :  { %v1611_v30 = vpop.xlane.xlu0 %1610 }
 0xa3f   :  { %v1615_v31 = vsub.f32 %v1607_v27, %v1611_v30  ;;  %v4373_v30 = vld [vmem:[%s5742_s8] ss:$0 sm:$0xff] }
 0xa41   :  { %v1617_v32 = vmul.f32 1.442695, %v1615_v31 }
 0xa43   :  { %5019 = vpow2.f32 %v1617_v32 }
 0xa4d   :  { %v5020_v34 = vpop.eup %5019 }
 0xa4e   :  { %v1621_v37 = vsel %vm204_vm2, %v5020_v34, 0.0 }
 0xa4f   :  { %1622 = vadd.xlane.f32.xlu0 %v1621_v37 }
 0xa81   :  { %v1603_v38 = vpop.f32.mrb[10].mxu0 }
 0xa82   :  { %v1608_v40 = vmul.f32 0.35355338, %v1603_v38  ;;  %v4692_v42 = vpop.f32.mrb[11].mxu0  ;;  %v2022_v38 = vld [vmem:[%s5743_s11] sm:$0xff] }
 0xa84   :  { %v1612_v43 = vsel %vm204_vm2, %v1608_v40, -inf }
 0xa85   :  { %1613 = vmax.xlane.f32.xlu1 %v1612_v43  ;;  %v2024_v43 = vld [vmem:[%s5743_s11 + $0x10] sm:$0xff] }
 0xa96   :  { %1707 = vrot.lane.b32.xlu1 %v5228_v39, %s5753_s19 }
 0xadc   :  { %v1623_v50 = vpop.xlane.xlu0 %1622 }
 0xb12   :  { %v1614_v44 = vpop.xlane.xlu1 %1613 }
 0xb13   :  { %v1616_v45 = vsub.f32 %v1608_v40, %v1614_v44  ;;  %v2023_v40 = vld [vmem:[%s5743_s11 + $0x8] sm:$0xff]  ;;  %v2025_v44 = vld [vmem:[%s5743_s11 + $0x18] sm:$0xff] }
 0xb14   :  { %v4906_v42 = vpack.c.bf16 %v2023_v40, %v2022_v38 }
 0xb15   :  { %v1619_v46 = vmul.f32 1.442695, %v1616_v45  ;;  %v4910_v45 = vpack.c.bf16 %v2025_v44, %v2024_v43  ;;  %v4380_v44 = vld [vmem:[%s5746_s13] ss:$0 sm:$0xff] }
 0xb16   :  { %v1708_v47 = vpop.permute.xlu1 %1707 }
 0xb17   :  { %5021 = vpow2.f32 %v1619_v46  ;;  %4699 = vmatpush3.msra.mxu0 %v1708_v47  ;;  %v2026_v46 = vld [vmem:[%s5743_s11 + $0x20] sm:$0xff]  ;;  %v2027_v47 = vld [vmem:[%s5743_s11 + $0x28] sm:$0xff] }
 0xb18   :  { %5023 = vrcp.f32 %v1623_v50  ;;  %4703 = vmatprep.subr.mxu0 %v112_v56  ;;  %v2029_v50 = vld [vmem:[%s5743_s11 + $0x38] sm:$0xff] }
 0xb21   :  { %v5022_v48 = vpop.eup %5021 }
 0xb22   :  { %v1624_v49 = vsel %vm204_vm2, %v5022_v48, 0.0  ;;  %v5024_v52 = vpop.eup %5023 }
 0xb23   :  { %1625 = vadd.xlane.f32.xlu0 %v1624_v49  ;;  %v1629_v53 = vmul.f32 %v5024_v52, %v5020_v34  ;;  %v2028_v49 = vld [vmem:[%s5743_s11 + $0x30] sm:$0xff]  ;;  %v4374_v52 = vld [vmem:[%s5744_s10] ss:$0 sm:$0xff] }
 0xb39   :  { %1631 = vrot.lane.b32.xlu0 %v5230_v41, %s5753_s19 }
 0xbb0   :  { %v1626_v51 = vpop.xlane.xlu0 %1625 }
 0xbb1   :  { %5025 = vrcp.f32 %v1626_v51  ;;  %v4918_v51 = vpack.c.bf16 %v2029_v50, %v2028_v49 }
 0xbb4   :  { %v1632_v39 = vpop.permute.xlu0 %1631 }
 0xbb5   :  { %4694 = vmatpush3.msra.mxu1 %v1632_v39 }
 0xbb6   :  { %4696 = vmatmul.mubr.msk.f32.vlgmr.msra.gmra.mrb[20].mxu1 %vm204_vm2, %v1629_v53 }
 0xbbb   :  { %v5026_v54 = vpop.eup %5025 }
 0xbbc   :  { %v1630_v55 = vmul.f32 %v5026_v54, %v5022_v48  ;;  %v4914_v48 = vpack.c.bf16 %v2027_v47, %v2026_v46 }
 0xbbe   :  { %4701 = vmatmul.mubr.msk.f32.vlgmr.msra.gmra.mrb[12].mxu0 %vm204_vm2, %v1630_v55 }
 0xbbf   :  { %4704 = vmatpush3.msra.mxu0 %v112_v56 }
 0xbc0   :  { %4907 = vmatprep.subr.bf16.mxu0 %v4906_v42 }
 0xc89   :  { %v1703_v41 = vpop.f32.mrb[20].mxu1 }
 0xc8a   :  { %v4697_v57 = vpop.f32.mrb[21].mxu1  ;;  %4705 = vmatprep.mubr.msk.f32.mxu0 %vm204_vm2, %v1703_v41 }
 0xc91   :  { %v1779_v58 = vpop.f32.mrb[12].mxu0 }
 0xc92   :  { %v4702_v59 = vpop.f32.mrb[13].mxu0  ;;  %4706 = vmatmul.mubr.msk.f32.vlgmr.msra.gmra.mrb[2].mxu0 %vm204_vm2, %v1779_v58 }
 0xc93   :  { %4909 = vmatpush3.bf16.msra.mxu0 %v4906_v42 }
 0xc94   :  { %4911 = vmatprep.subr.bf16.mxu0 %v4910_v45 }
 0xc97   :  { %4913 = vmatpush3.bf16.msra.mxu0 %v4910_v45 }
 0xc98   :  { %4915 = vmatprep.subr.bf16.mxu0 %v4914_v48 }
 0xc9b   :  { %4917 = vmatpush3.bf16.msra.mxu0 %v4914_v48  ;;  %v4381_v48 = vld [vmem:[%s5747_s14] ss:$0 sm:$0xff] }
 0xc9c   :  { %4919 = vmatprep.subr.bf16.mxu0 %v4918_v51 }
 0xc9f   :  { %4921 = vmatpush3.bf16.msra.mxu0 %v4918_v51 }
 0xca0   :  { %4759 = vmatprep.subr.mxu0 %v5083_v36 }
 0xd65   :  { %v4707_v61 = vpop.f32.mrb[2].mxu0 }
 0xd66   :  { %v4962_v62 = vadd.f32 %v4707_v61, %v4347_v60  ;;  %v1855_v63 = vpop.f32.mrb[3].mxu0 }
 0xd67   :  { %v4963_v0 = vadd.f32 %v4347_v60, %v1855_v63 }
 0xd68   :  { %v1867_v1 = vadd.f32 %v4962_v62, %v5218_v35 }
 0xd69   :  { %v1866_v2 = vadd.f32 %v4963_v0, %v5214_v33  ;;  %v1912_v33 = vld [vmem:[%s5740_s9] sm:$0xff] }
 0xd6a   :  { %v1873_v3 = vsel %vm60_vm0, %v1867_v1, 0.0  ;;  %v4898_v15 = vpack.c.bf16 %v1913_v14, %v1912_v33 }
 0xd6b   :  { %1874 = vadd.xlane.f32.xlu0 %v1873_v3  ;;  %v1870_v4 = vsel %vm60_vm0, %v1866_v2, 0.0 }
 0xd6c   :  { %1871 = vadd.xlane.f32.xlu1 %v1870_v4  ;;  %4899 = vmatprep.subr.bf16.mxu1 %v4898_v15 }
 0xd6d   :  { %4901 = vmatpush3.bf16.msra.mxu1 %v4898_v15 }
 0xd6e   :  { %4903 = vmatprep.subr.bf16.mxu1 %v4902_v18 }
 0xd71   :  { %4905 = vmatpush3.bf16.msra.mxu1 %v4902_v18 }
 0xdf8   :  { %v1875_v5 = vpop.xlane.xlu0 %1874 }
 0xdf9   :  { %v1877_v6 = vmul.f32 0.03125, %v1875_v5  ;;  %v1872_v7 = vpop.xlane.xlu1 %1871 }
 0xdfa   :  { %v1876_v8 = vmul.f32 0.03125, %v1872_v7 }
 0xdfb   :  { %v1879_v9 = vsub.f32 %v1867_v1, %v1877_v6 }
 0xdfc   :  { %v1878_v10 = vsub.f32 %v1866_v2, %v1876_v8 }
 0xdfd   :  { %v1881_v11 = vmul.f32 %v1879_v9, %v1879_v9 }
 0xdfe   :  { %v1880_v12 = vmul.f32 %v1878_v10, %v1878_v10 }
 0xdff   :  { %v1885_v13 = vsel %vm60_vm0, %v1881_v11, 0.0 }
 0xe00   :  { %1886 = vadd.xlane.f32.xlu1 %v1885_v13  ;;  %v1882_v35 = vsel %vm60_vm0, %v1880_v12, 0.0 }
 0xe01   :  { %1883 = vadd.xlane.f32.xlu0 %v1882_v35 }
 0xe8d   :  { %v1887_v19 = vpop.xlane.xlu1 %1886 }
 0xe8e   :  { %v1889_v20 = vmul.f32 0.03125, %v1887_v19  ;;  %v1884_v21 = vpop.xlane.xlu0 %1883 }
 0xe8f   :  { %v1888_v22 = vmul.f32 0.03125, %v1884_v21 }
 0xe90   :  { %v1891_v23 = vadd.f32 1e-12, %v1889_v20 }
 0xe91   :  { %v1890_v24 = vadd.f32 1e-12, %v1888_v22 }
 0xe92   :  { %5027 = vrsqrt.f32 %v1891_v23 }
 0xe93   :  { %5029 = vrsqrt.f32 %v1890_v24 }
 0xe9c   :  { %v5028_v25 = vpop.eup %5027 }
 0xe9d   :  { %v5030_v27 = vpop.eup %5029  ;;  %v1895_v28 = vmul.f32 %v5028_v25, %v1879_v9  ;;  %v4377_v9 = vld [vmem:[%s5745_s12] ss:$0 sm:$0xff] }
 0xe9e   :  { %v1894_v29 = vmul.f32 %v5030_v27, %v1878_v10  ;;  %v4383_v27 = vld [vmem:[%s5766_s30 + $0x28] sm:$0xff] }
 0xe9f   :  { %v1903_v31 = vmul.f32 %v4372_v26, %v1895_v28 }
 0xea0   :  { %v1902_v32 = vmul.f32 %v4372_v26, %v1894_v29  ;;  %v4382_v26 = vld [vmem:[%s5766_s30 + $0x20] sm:$0xff]  ;;  %v4384_v29 = vld [vmem:[%s5766_s30 + $0x30] sm:$0xff] }
 0xea1   :  { %v1911_v37 = vadd.f32 %v4373_v30, %v1903_v31  ;;  %v4922_v28 = vpack.c.bf16 %v4383_v27, %v4382_v26 }
 0xea2   :  { %v5410_v34 = vadd.f32 %v4373_v30, %v1902_v32  ;;  %v4385_v30 = vld [vmem:[%s5766_s30 + $0x38] sm:$0xff] }
 0xea3   :  { %4923 = vmatprep.subr.bf16.mxu1 %v4922_v28  ;;  %v4926_v31 = vpack.c.bf16 %v4385_v30, %v4384_v29 }
 0xea4   :  { %4716 = vmatprep.mubr.msk.f32.mxu1 %vm60_vm0, %v5410_v34 }
 0xea5   :  { %4717 = vmatmul.mubr.msk.f32.vlgmr.msra.gmra.mrb[22].mxu1 %vm60_vm0, %v1911_v37 }
 0xea6   :  { %4925 = vmatpush3.bf16.msra.mxu1 %v4922_v28 }
 0xea7   :  { %4927 = vmatprep.subr.bf16.mxu1 %v4926_v31 }
 0xeaa   :  { %4929 = vmatpush3.bf16.msra.mxu1 %v4926_v31 }
 0xeab   :  { %4749 = vmatprep.subr.mxu1 %v5083_v36 }
 0xf78   :  { %v4718_v53 = vpop.f32.mrb[22].mxu1 }
 0xf79   :  { %v2001_v39 = vadd.f32 %v4718_v53, %v4374_v52  ;;  %v1995_v54 = vpop.f32.mrb[23].mxu1  ;;  %v4392_v53 = vld [vmem:[%s5737_s4 + $0x1] ss:$0 sm:$0xff] }
 0xf7a   :  { %v1996_v55 = vadd.f32 %v4374_v52, %v1995_v54 }
 0xf7b   :  { %v2007_v56 = vmul.f32 0.044715, %v2001_v39  ;;  %v2005_v6 = vmul.f32 0.5, %v2001_v39 }
 0xf7c   :  { %v2006_v41 = vmul.f32 0.044715, %v1996_v55  ;;  %v2004_v4 = vmul.f32 0.5, %v1996_v55 }
 0xf7d   :  { %v2009_v57 = vmul.f32 %v2007_v56, %v2001_v39 }
 0xf7e   :  { %v2008_v58 = vmul.f32 %v2006_v41, %v1996_v55 }
 0xf7f   :  { %v2011_v59 = vmul.f32 %v2009_v57, %v2001_v39 }
 0xf80   :  { %v2010_v60 = vmul.f32 %v2008_v58, %v1996_v55 }
 0xf81   :  { %v2013_v61 = vadd.f32 %v2011_v59, %v2001_v39 }
 0xf82   :  { %v2012_v62 = vadd.f32 %v2010_v60, %v1996_v55 }
 0xf83   :  { %v2015_v63 = vmul.f32 0.7978846, %v2013_v61 }
 0xf84   :  { %v2014_v0 = vmul.f32 0.7978846, %v2012_v62 }
 0xf85   :  { %5031 = vtanh.f32 %v2015_v63 }
 0xf86   :  { %5033 = vtanh.f32 %v2014_v0 }
 0xf8f   :  { %v5032_v1 = vpop.eup %5031 }
 0xf90   :  { %v5034_v2 = vpop.eup %5033  ;;  %v2019_v3 = vadd.f32 1.0, %v5032_v1 }
 0xf91   :  { %v2018_v5 = vadd.f32 1.0, %v5034_v2 }
 0xf92   :  { %v2021_v8 = vmul.f32 %v2019_v3, %v2005_v6 }
 0xf93   :  { %v2020_v7 = vmul.f32 %v2018_v5, %v2004_v4 }
 0xf95   :  { %4735 = vmatprep.mubr.msk.f32.mxu0 %vm2037_vm3, %v2020_v7 }
 0xf96   :  { %4736 = vmatmul.mubr.msk.f32.vlgmr.msra.gmra.mrb[14].mxu0 %vm2037_vm3, %v2021_v8 }
 0xf97   :  { %4761 = vmatprep.mubr.msk.f32.mxu0 %vm5084_vm1, %v5083_v36 }
0x1069   :  { %v4737_v10 = vpop.f32.mrb[14].mxu0 }
0x106a   :  { %v2116_v11 = vadd.f32 %v4737_v10, %v4377_v9  ;;  %v2110_v12 = vpop.f32.mrb[15].mxu0 }
0x106b   :  { %v2111_v13 = vadd.f32 %v4377_v9, %v2110_v12 }
0x106c   :  { %v2120_v35 = vadd.f32 %v2116_v11, %v1911_v37 }
0x106d   :  { %v2119_v33 = vadd.f32 %v2111_v13, %v5410_v34  ;;  %v4387_v13 = vld [vmem:[%s5738_s5 + $0x20] sm:$0xff] }
0x106e   :  { %v2126_v14 = vsel %vm60_vm0, %v2120_v35, 0.0 }
0x106f   :  { %2127 = vadd.xlane.f32.xlu1 %v2126_v14  ;;  %v2123_v15 = vsel %vm60_vm0, %v2119_v33, 0.0 }
0x1070   :  { %2124 = vadd.xlane.f32.xlu0 %v2123_v15 }
0x10fc   :  { %v2128_v16 = vpop.xlane.xlu1 %2127 }
0x10fd   :  { %v2130_v17 = vmul.f32 0.03125, %v2128_v16  ;;  %v2125_v18 = vpop.xlane.xlu0 %2124 }
0x10fe   :  { %v2129_v19 = vmul.f32 0.03125, %v2125_v18 }
0x10ff   :  { %v2132_v20 = vsub.f32 %v2120_v35, %v2130_v17 }
0x1100   :  { %v2131_v21 = vsub.f32 %v2119_v33, %v2129_v19 }
0x1101   :  { %v2134_v22 = vmul.f32 %v2132_v20, %v2132_v20 }
0x1102   :  { %v2133_v23 = vmul.f32 %v2131_v21, %v2131_v21 }
0x1103   :  { %v2138_v24 = vsel %vm60_vm0, %v2134_v22, 0.0 }
0x1104   :  { %2139 = vadd.xlane.f32.xlu1 %v2138_v24  ;;  %v2135_v25 = vsel %vm60_vm0, %v2133_v23, 0.0 }
0x1105   :  { %2136 = vadd.xlane.f32.xlu0 %v2135_v25 }
0x1191   :  { %v2140_v32 = vpop.xlane.xlu1 %2139 }
0x1192   :  { %v2142_v34 = vmul.f32 0.03125, %v2140_v32  ;;  %v2137_v37 = vpop.xlane.xlu0 %2136 }
0x1193   :  { %v2141_v38 = vmul.f32 0.03125, %v2137_v37 }
0x1194   :  { %v2144_v40 = vadd.f32 1e-12, %v2142_v34 }
0x1195   :  { %v2143_v42 = vadd.f32 1e-12, %v2141_v38 }
0x1196   :  { %5035 = vrsqrt.f32 %v2144_v40 }
0x1197   :  { %5037 = vrsqrt.f32 %v2143_v42 }
0x11a0   :  { %v5036_v43 = vpop.eup %5035 }
0x11a1   :  { %v5038_v45 = vpop.eup %5037  ;;  %v2148_v46 = vmul.f32 %v5036_v43, %v2132_v20 }
0x11a2   :  { %v2147_v47 = vmul.f32 %v5038_v45, %v2131_v21 }
0x11a3   :  { %v2156_v49 = vmul.f32 %v4380_v44, %v2148_v46 }
0x11a4   :  { %v2155_v50 = vmul.f32 %v4380_v44, %v2147_v47 }
0x11a5   :  { %v5476_v52 = vadd.f32 %v4381_v48, %v2156_v49 }
0x11a6   :  { %v5474_v51 = vadd.f32 %v4381_v48, %v2155_v50 }
0x11a8   :  { %4746 = vmatprep.mubr.msk.f32.mxu1 %vm60_vm0, %v5474_v51 }
0x11a9   :  { %4747 = vmatmul.mubr.msk.f32.vlgmr.msra.gmra.mrb[24].mxu1 %vm60_vm0, %v5476_v52 }
0x11aa   :  { %4751 = vmatprep.mubr.msk.f32.mxu1 %vm5084_vm1, %v5083_v36 }
0x127c   :  { %v4748_v39 = vpop.f32.mrb[24].mxu1 }
0x127d   :  { %v5487_v54 = vadd.f32 %v4748_v39, %v4392_v53  ;;  %v2257_v55 = vpop.f32.mrb[25].mxu1 }
0x127e   :  { %v5489_v56 = vadd.f32 %v4392_v53, %v2257_v55 }
0x127f   :  { %2344 = vrot.lane.b32.xlu1 %v5487_v54, %s5085_s27 }
0x1280   :  { %2267 = vrot.lane.b32.xlu0 %v5489_v56, %s5085_s27 }
0x12f1   :  { %v2345_v57 = vpop.permute.xlu1 %2344 }
0x12f2   :  { %v2268_v41 = vpop.permute.xlu0 %2267 }
0x12f3   :  { %4750 = vmatpush3.xpose.msk.msra.mxu1 %vm204_vm2, %v2268_v41 }
0x12f4   :  { %4754 = vmatprep.subr.mxu1 %v5083_v36 }
0x12f6   :  { %4752 = vmatmul.mubr.msk.f32.vlgmr.msra.gmra.mrb[26].mxu1 %vm204_vm2, %v5489_v56 }
0x12f7   :  { %4755 = vmatpush3.xpose.msk.msra.mxu1 %vm204_vm2, %v2345_v57  ;;  %4756 = vmatprep.mubr.msk.f32.mxu1 %vm5084_vm1, %v5083_v36 }
0x12f8   :  { %4764 = vmatprep.subr.mxu1 %v5083_v36 }
0x12fa   :  { %4757 = vmatmul.mubr.msk.f32.vlgmr.msra.gmra.mrb[28].mxu1 %vm204_vm2, %v5487_v54 }
0x12fb   :  { %4766 = vmatprep.mubr.msk.f32.mxu1 %vm5084_vm1, %v5083_v36 }
0x13c9   :  { %v2339_v58 = vpop.f32.mrb[26].mxu1 }
0x13ca   :  { %v2420_v59 = vmul.f32 0.35355338, %v2339_v58  ;;  %v4753_v60 = vpop.f32.mrb[27].mxu1 }
0x13cc   :  { %v2422_v61 = vsel %vm204_vm2, %v2420_v59, -inf }
0x13cd   :  { %2423 = vmax.xlane.f32.xlu1 %v2422_v61  ;;  %v2416_v62 = vpop.f32.mrb[28].mxu1 }
0x13ce   :  { %v2421_v63 = vmul.f32 0.35355338, %v2416_v62  ;;  %v4758_v0 = vpop.f32.mrb[29].mxu1 }
0x13d0   :  { %v2425_v1 = vsel %vm204_vm2, %v2421_v63, -inf }
0x13d1   :  { %2426 = vmax.xlane.f32.xlu0 %v2425_v1 }
0x145a   :  { %v2424_v2 = vpop.xlane.xlu1 %2423 }
0x145b   :  { %v2428_v3 = vsub.f32 %v2420_v59, %v2424_v2 }
0x145d   :  { %v2430_v4 = vmul.f32 1.442695, %v2428_v3 }
0x145e   :  { %v2427_v5 = vpop.xlane.xlu0 %2426 }
0x145f   :  { %5039 = vpow2.f32 %v2430_v4  ;;  %v2429_v6 = vsub.f32 %v2421_v63, %v2427_v5 }
0x1461   :  { %v2432_v7 = vmul.f32 1.442695, %v2429_v6 }
0x1463   :  { %5041 = vpow2.f32 %v2432_v7 }
0x1469   :  { %v5040_v8 = vpop.eup %5039 }
0x146a   :  { %v2434_v9 = vsel %vm204_vm2, %v5040_v8, 0.0 }
0x146b   :  { %2435 = vadd.xlane.f32.xlu0 %v2434_v9 }
0x146d   :  { %v5042_v10 = vpop.eup %5041 }
0x146e   :  { %v2437_v11 = vsel %vm204_vm2, %v5042_v10, 0.0 }
0x146f   :  { %2438 = vadd.xlane.f32.xlu1 %v2437_v11  ;;  %v4388_v11 = vld [vmem:[%s5738_s5 + $0x28] sm:$0xff] }
0x1480   :  { %2520 = vrot.lane.b32.xlu1 %v5487_v54, %s5086_s28 }
0x1481   :  { %2444 = vrot.lane.b32.xlu0 %v5489_v56, %s5086_s28  ;;  %s5767_s28 = smov 112  }
0x1484   :  { %2687 = vrot.lane.b32.xlu1 %v5489_v56, %s5087_s29 }
0x1485   :  { %2765 = vrot.lane.b32.xlu0 %v5487_v54, %s5087_s29  ;;  %s5768_s29 = smov 48  }
0x1488   :  { %2685 = vrot.lane.b32.xlu1 %v5489_v56, %s5088_s0 }
0x148c   :  { %2763 = vrot.lane.b32.xlu1 %v5487_v54, %s5088_s0  ;;  %s5769_s0 = smov 72  }
0x1490   :  { %3102 = vrot.lane.b32.xlu1 %v5489_v56, %s5089_s18 }
0x14f8   :  { %v2436_v12 = vpop.xlane.xlu0 %2435 }
0x14f9   :  { %5043 = vrcp.f32 %v2436_v12 }
0x14fc   :  { %v2439_v35 = vpop.xlane.xlu1 %2438  ;;  %v2445_v33 = vpop.permute.xlu0 %2444 }
0x14fd   :  { %5045 = vrcp.f32 %v2439_v35  ;;  %4760 = vmatpush3.msra.mxu0 %v2445_v33 }
0x14fe   :  { %4769 = vmatprep.subr.mxu0 %v4387_v13 }
0x1500   :  { %v2521_v14 = vpop.permute.xlu1 %2520  ;;  %v2766_v24 = vpop.permute.xlu0 %2765 }
0x1501   :  { %4765 = vmatpush3.msra.mxu1 %v2521_v14 }
0x1502   :  { %4774 = vmatprep.subr.mxu1 %v5083_v36 }
0x1503   :  { %v5044_v15 = vpop.eup %5043 }
0x1504   :  { %v2442_v16 = vmul.f32 %v5044_v15, %v5040_v8  ;;  %v2688_v18 = vpop.permute.xlu1 %2687 }
0x1506   :  { %4762 = vmatmul.mubr.msk.f32.vlgmr.msra.gmra.mrb[16].mxu0 %vm204_vm2, %v2442_v16 }
0x1507   :  { %v5046_v17 = vpop.eup %5045  ;;  %4770 = vmatpush3.msra.mxu0 %v4387_v13 }
0x1508   :  { %v2443_v19 = vmul.f32 %v5046_v17, %v5042_v10  ;;  %4779 = vmatprep.subr.mxu0 %v5083_v36  ;;  %v2686_v20 = vpop.permute.xlu1 %2685 }
0x150a   :  { %4767 = vmatmul.mubr.msk.f32.vlgmr.msra.gmra.mrb[30].mxu1 %vm204_vm2, %v2443_v19 }
0x150b   :  { %4775 = vmatpush3.xpose.msk.msra.mxu1 %vm204_vm2, %v2688_v18  ;;  %4776 = vmatprep.mubr.msk.f32.mxu1 %vm5084_vm1, %v5083_v36 }
0x150c   :  { %4784 = vmatprep.subr.mxu1 %v5083_v36  ;;  %v2764_v26 = vpop.permute.xlu1 %2763 }
0x150e   :  { %4777 = vmatmul.mubr.msk.f32.vlgmr.msra.gmra.mrb[32].mxu1 %vm204_vm2, %v2686_v20 }
0x150f   :  { %4786 = vmatprep.mubr.msk.f32.mxu1 %vm5084_vm1, %v5083_v36 }
0x1510   :  { %v3103_v46 = vpop.permute.xlu1 %3102 }
0x15d9   :  { %v2516_v21 = vpop.f32.mrb[16].mxu0 }
0x15da   :  { %v4763_v22 = vpop.f32.mrb[17].mxu0  ;;  %4771 = vmatprep.mubr.msk.f32.mxu0 %vm204_vm2, %v2516_v21 }
0x15dd   :  { %v2592_v23 = vpop.f32.mrb[30].mxu1 }
0x15de   :  { %v4768_v25 = vpop.f32.mrb[31].mxu1  ;;  %4772 = vmatmul.mubr.msk.f32.vlgmr.msra.gmra.mrb[18].mxu0 %vm204_vm2, %v2592_v23 }
0x15df   :  { %4780 = vmatpush3.xpose.msk.msra.mxu0 %vm204_vm2, %v2766_v24  ;;  %4781 = vmatprep.mubr.msk.f32.mxu0 %vm5084_vm1, %v5083_v36  ;;  %v4389_v24 = vld [vmem:[%s5738_s5 + $0x30] sm:$0xff] }
0x15e0   :  { %4789 = vmatprep.subr.mxu0 %v5083_v36 }
0x15e1   :  { %v2759_v27 = vpop.f32.mrb[32].mxu1 }
0x15e2   :  { %v2841_v28 = vmul.f32 0.35355338, %v2759_v27  ;;  %v4778_v29 = vpop.f32.mrb[33].mxu1  ;;  %4782 = vmatmul.mubr.msk.f32.vlgmr.msra.gmra.mrb[20].mxu0 %vm204_vm2, %v2764_v26 }
0x15e3   :  { %4791 = vmatprep.mubr.msk.f32.mxu0 %vm5084_vm1, %v5083_v36 }
0x15e4   :  { %v2843_v30 = vsel %vm204_vm2, %v2841_v28, -inf }
0x15e5   :  { %2844 = vmax.xlane.f32.xlu0 %v2843_v30 }
0x15fb   :  { %2865 = vrot.lane.b32.xlu0 %v5489_v56, %s5090_s20 }
0x15ff   :  { %3100 = vrot.lane.b32.xlu0 %v5489_v56, %s5767_s28 }
0x1603   :  { %3178 = vrot.lane.b32.xlu0 %v5487_v54, %s5767_s28 }
0x1672   :  { %v2845_v31 = vpop.xlane.xlu0 %2844 }
0x1673   :  { %v2849_v32 = vsub.f32 %v2841_v28, %v2845_v31 }
0x1675   :  { %v2851_v34 = vmul.f32 1.442695, %v2849_v32 }
0x1676   :  { %v2866_v37 = vpop.permute.xlu0 %2865 }
0x1677   :  { %5047 = vpow2.f32 %v2851_v34  ;;  %4785 = vmatpush3.msra.mxu1 %v2866_v37 }
0x1678   :  { %4799 = vmatprep.subr.mxu1 %v5083_v36 }
0x167a   :  { %v3101_v50 = vpop.permute.xlu0 %3100 }
0x167e   :  { %v3179_v39 = vpop.permute.xlu0 %3178 }
0x1681   :  { %v5048_v38 = vpop.eup %5047 }
0x1682   :  { %v2855_v40 = vsel %vm204_vm2, %v5048_v38, 0.0 }
0x1683   :  { %2856 = vadd.xlane.f32.xlu1 %v2855_v40 }
0x1694   :  { %3180 = vrot.lane.b32.xlu1 %v5487_v54, %s5089_s18  ;;  %s5770_s18 = smov 104  }
0x16b5   :  { %v2837_v42 = vpop.f32.mrb[20].mxu0 }
0x16b6   :  { %v2842_v43 = vmul.f32 0.35355338, %v2837_v42  ;;  %v4783_v44 = vpop.f32.mrb[21].mxu0 }
0x16b8   :  { %v2846_v45 = vsel %vm204_vm2, %v2842_v43, -inf }
0x16b9   :  { %2847 = vmax.xlane.f32.xlu1 %v2846_v45 }
0x1710   :  { %v2857_v47 = vpop.xlane.xlu1 %2856 }
0x1711   :  { %5049 = vrcp.f32 %v2857_v47 }
0x1714   :  { %v3181_v53 = vpop.permute.xlu1 %3180 }
0x171b   :  { %v5050_v48 = vpop.eup %5049 }
0x171c   :  { %v2863_v49 = vmul.f32 %v5050_v48, %v5048_v38 }
0x171e   :  { %4787 = vmatmul.mubr.msk.f32.vlgmr.msra.gmra.mrb[34].mxu1 %vm204_vm2, %v2863_v49 }
0x171f   :  { %4800 = vmatpush3.xpose.msk.msra.mxu1 %vm204_vm2, %v3103_v46  ;;  %4801 = vmatprep.mubr.msk.f32.mxu1 %vm5084_vm1, %v5083_v36 }
0x1720   :  { %4804 = vmatprep.subr.mxu1 %v5083_v36 }
0x1722   :  { %4802 = vmatmul.mubr.msk.f32.vlgmr.msra.gmra.mrb[36].mxu1 %vm204_vm2, %v3101_v50 }
0x1723   :  { %4805 = vmatpush3.xpose.msk.msra.mxu1 %vm204_vm2, %v3181_v53  ;;  %4806 = vmatprep.mubr.msk.f32.mxu1 %vm5084_vm1, %v5083_v36 }
0x1724   :  { %4814 = vmatprep.subr.mxu1 %v5083_v36 }
0x1726   :  { %4807 = vmatmul.mubr.msk.f32.vlgmr.msra.gmra.mrb[38].mxu1 %vm204_vm2, %v3179_v39 }
0x1727   :  { %4816 = vmatprep.mubr.msk.f32.mxu1 %vm5084_vm1, %v5083_v36 }
0x1746   :  { %v2848_v55 = vpop.xlane.xlu1 %2847 }
0x1747   :  { %v2850_v41 = vsub.f32 %v2842_v43, %v2848_v55 }
0x1749   :  { %v2853_v57 = vmul.f32 1.442695, %v2850_v41 }
0x174b   :  { %5051 = vpow2.f32 %v2853_v57 }
0x1755   :  { %v5052_v58 = vpop.eup %5051 }
0x1756   :  { %v2858_v59 = vsel %vm204_vm2, %v5052_v58, 0.0 }
0x1757   :  { %2859 = vadd.xlane.f32.xlu0 %v2858_v59 }
0x176d   :  { %2941 = vrot.lane.b32.xlu0 %v5487_v54, %s5090_s20 }
0x1771   :  { %3356 = vrot.lane.b32.xlu0 %v5487_v54, %s5768_s29 }
0x1775   :  { %3517 = vrot.lane.b32.xlu0 %v5489_v56, %s5769_s0 }
0x1779   :  { %3595 = vrot.lane.b32.xlu0 %v5487_v54, %s5769_s0 }
0x177d   :  { %3515 = vrot.lane.b32.xlu0 %v5489_v56, %s5770_s18 }
0x17e4   :  { %v2860_v60 = vpop.xlane.xlu0 %2859 }
0x17e5   :  { %5053 = vrcp.f32 %v2860_v60 }
0x17e8   :  { %v2942_v61 = vpop.permute.xlu0 %2941 }
0x17e9   :  { %4790 = vmatpush3.msra.mxu0 %v2942_v61 }
0x17ea   :  { %4794 = vmatprep.subr.mxu0 %v4388_v11 }
0x17ec   :  { %v3357_v62 = vpop.permute.xlu0 %3356 }
0x17ed   :  { %4815 = vmatpush3.msra.mxu1 %v3357_v62 }
0x17ee   :  { %4824 = vmatprep.subr.mxu1 %v5083_v36 }
0x17ef   :  { %v5054_v63 = vpop.eup %5053 }
0x17f0   :  { %v2864_v0 = vmul.f32 %v5054_v63, %v5052_v58  ;;  %v3518_v26 = vpop.permute.xlu0 %3517 }
0x17f1   :  { %v2937_v1 = vpop.f32.mrb[34].mxu1 }
0x17f2   :  { %v4788_v2 = vpop.f32.mrb[35].mxu1  ;;  %4792 = vmatmul.mubr.msk.f32.vlgmr.msra.gmra.mrb[22].mxu0 %vm204_vm2, %v2864_v0 }
0x17f3   :  { %4796 = vmatprep.mubr.msk.f32.mxu0 %vm204_vm2, %v2937_v1  ;;  %4795 = vmatpush3.msra.mxu0 %v4388_v11 }
0x17f4   :  { %4809 = vmatprep.subr.mxu0 %v5083_v36  ;;  %v3596_v30 = vpop.permute.xlu0 %3595 }
0x17f5   :  { %v3174_v3 = vpop.f32.mrb[36].mxu1 }
0x17f6   :  { %v3256_v4 = vmul.f32 0.35355338, %v3174_v3  ;;  %v4803_v5 = vpop.f32.mrb[37].mxu1 }
0x17f7   :  { %v4390_v5 = vld [vmem:[%s5738_s5 + $0x38] sm:$0xff] }
0x17f8   :  { %v3258_v6 = vsel %vm204_vm2, %v3256_v4, -inf  ;;  %v3516_v32 = vpop.permute.xlu0 %3515 }
0x17f9   :  { %3259 = vmax.xlane.f32.xlu1 %v3258_v6  ;;  %v3252_v7 = vpop.f32.mrb[38].mxu1 }
0x17fa   :  { %v3257_v8 = vmul.f32 0.35355338, %v3252_v7  ;;  %v4808_v9 = vpop.f32.mrb[39].mxu1 }
0x17fb   :  { %v4403_v9 = vld [vmem:[%s5739_s6 + $0x1] ss:$0 sm:$0xff] }
0x17fc   :  { %v3261_v10 = vsel %vm204_vm2, %v3257_v8, -inf }
0x17fd   :  { %3262 = vmax.xlane.f32.xlu1 %v3261_v10 }
0x1886   :  { %v3260_v12 = vpop.xlane.xlu1 %3259 }
0x1887   :  { %v3264_v13 = vsub.f32 %v3256_v4, %v3260_v12 }
0x1889   :  { %v3266_v35 = vmul.f32 1.442695, %v3264_v13 }
0x188a   :  { %v3263_v33 = vpop.xlane.xlu1 %3262 }
0x188b   :  { %5055 = vpow2.f32 %v3266_v35  ;;  %v3265_v14 = vsub.f32 %v3257_v8, %v3263_v33 }
0x188d   :  { %v3268_v15 = vmul.f32 1.442695, %v3265_v14 }
0x188f   :  { %5057 = vpow2.f32 %v3268_v15 }
0x1895   :  { %v5056_v16 = vpop.eup %5055 }
0x1896   :  { %v3270_v17 = vsel %vm204_vm2, %v5056_v16, 0.0 }
0x1897   :  { %3271 = vadd.xlane.f32.xlu1 %v3270_v17 }
0x1899   :  { %v5058_v18 = vpop.eup %5057 }
0x189a   :  { %v3273_v19 = vsel %vm204_vm2, %v5058_v18, 0.0 }
0x189b   :  { %3274 = vadd.xlane.f32.xlu1 %v3273_v19 }
0x18ac   :  { %3280 = vrot.lane.b32.xlu1 %v5489_v56, %s5768_s29 }
0x18b0   :  { %3593 = vrot.lane.b32.xlu1 %v5487_v54, %s5770_s18 }
0x18c5   :  { %v3013_v20 = vpop.f32.mrb[22].mxu0 }
0x18c6   :  { %v4793_v21 = vpop.f32.mrb[23].mxu0  ;;  %4797 = vmatmul.mubr.msk.f32.vlgmr.msra.gmra.mrb[18].mxu0 %vm204_vm2, %v3013_v20 }
0x18c7   :  { %4811 = vmatprep.mubr.msk.f32.mxu0 %vm5084_vm1, %v5083_v36 }
0x1924   :  { %v3272_v22 = vpop.xlane.xlu1 %3271 }
0x1925   :  { %5059 = vrcp.f32 %v3272_v22 }
0x1928   :  { %v3275_v23 = vpop.xlane.xlu1 %3274 }
0x1929   :  { %5061 = vrcp.f32 %v3275_v23 }
0x192c   :  { %v3281_v25 = vpop.permute.xlu1 %3280 }
0x192d   :  { %4810 = vmatpush3.msra.mxu0 %v3281_v25  ;;  %v4433_v25 = vld [vmem:[%s5740_s9 + $0x28] sm:$0xff] }
0x192e   :  { %4819 = vmatprep.subr.mxu0 %v4389_v24 }
0x192f   :  { %v5060_v27 = vpop.eup %5059 }
0x1930   :  { %v3278_v28 = vmul.f32 %v5060_v27, %v5056_v16  ;;  %v3594_v42 = vpop.permute.xlu1 %3593  ;;  %v4434_v27 = vld [vmem:[%s5740_s9 + $0x30] sm:$0xff] }
0x1932   :  { %4812 = vmatmul.mubr.msk.f32.vlgmr.msra.gmra.mrb[24].mxu0 %vm204_vm2, %v3278_v28  ;;  %v4435_v28 = vld [vmem:[%s5740_s9 + $0x38] sm:$0xff] }
0x1933   :  { %v5062_v29 = vpop.eup %5061  ;;  %4820 = vmatpush3.msra.mxu0 %v4389_v24 }
0x1934   :  { %v3279_v31 = vmul.f32 %v5062_v29, %v5058_v18  ;;  %4829 = vmatprep.subr.mxu0 %v5083_v36  ;;  %v4934_v29 = vpack.c.bf16 %v4435_v28, %v4434_v27 }
0x1936   :  { %4817 = vmatmul.mubr.msk.f32.vlgmr.msra.gmra.mrb[40].mxu1 %vm204_vm2, %v3279_v31 }
0x1937   :  { %4825 = vmatpush3.xpose.msk.msra.mxu1 %vm204_vm2, %v3518_v26  ;;  %4826 = vmatprep.mubr.msk.f32.mxu1 %vm5084_vm1, %v5083_v36 }
0x1938   :  { %4834 = vmatprep.subr.mxu1 %v5083_v36 }
0x193a   :  { %4827 = vmatmul.mubr.msk.f32.vlgmr.msra.gmra.mrb[42].mxu1 %vm204_vm2, %v3516_v32 }
0x193b   :  { %4836 = vmatprep.mubr.msk.f32.mxu1 %vm5084_vm1, %v5083_v36 }
0x1a05   :  { %v3352_v34 = vpop.f32.mrb[24].mxu0 }
0x1a06   :  { %v4813_v37 = vpop.f32.mrb[25].mxu0  ;;  %4821 = vmatprep.mubr.msk.f32.mxu0 %vm204_vm2, %v3352_v34 }
0x1a09   :  { %v3428_v38 = vpop.f32.mrb[40].mxu1 }
0x1a0a   :  { %v4818_v40 = vpop.f32.mrb[41].mxu1  ;;  %4822 = vmatmul.mubr.msk.f32.vlgmr.msra.gmra.mrb[18].mxu0 %vm204_vm2, %v3428_v38 }
0x1a0b   :  { %4830 = vmatpush3.xpose.msk.msra.mxu0 %vm204_vm2, %v3596_v30  ;;  %4831 = vmatprep.mubr.msk.f32.mxu0 %vm5084_vm1, %v5083_v36 }
0x1a0c   :  { %4839 = vmatprep.subr.mxu0 %v5083_v36 }
0x1a0d   :  { %v3589_v43 = vpop.f32.mrb[42].mxu1 }
0x1a0e   :  { %v3671_v44 = vmul.f32 0.35355338, %v3589_v43  ;;  %v4828_v45 = vpop.f32.mrb[43].mxu1  ;;  %4832 = vmatmul.mubr.msk.f32.vlgmr.msra.gmra.mrb[26].mxu0 %vm204_vm2, %v3594_v42  ;;  %v4430_v42 = vld [vmem:[%s5741_s7 + $0x1] ss:$0 sm:$0xff] }
0x1a0f   :  { %4841 = vmatprep.mubr.msk.f32.mxu0 %vm5084_vm1, %v5083_v36 }
0x1a10   :  { %v3673_v46 = vsel %vm204_vm2, %v3671_v44, -inf }
0x1a11   :  { %3674 = vmax.xlane.f32.xlu0 %v3673_v46  ;;  %v4431_v46 = vld [vmem:[%s5742_s8 + $0x1] ss:$0 sm:$0xff] }
0x1a9e   :  { %v3675_v47 = vpop.xlane.xlu0 %3674 }
0x1a9f   :  { %v3679_v48 = vsub.f32 %v3671_v44, %v3675_v47 }
0x1aa1   :  { %v3681_v49 = vmul.f32 1.442695, %v3679_v48 }
0x1aa3   :  { %5063 = vpow2.f32 %v3681_v49 }
0x1aad   :  { %v5064_v50 = vpop.eup %5063 }
0x1aae   :  { %v3685_v53 = vsel %vm204_vm2, %v5064_v50, 0.0 }
0x1aaf   :  { %3686 = vadd.xlane.f32.xlu0 %v3685_v53  ;;  %v4440_v53 = vld [vmem:[%s5743_s11 + $0x40] sm:$0xff] }
0x1ae1   :  { %v3667_v39 = vpop.f32.mrb[26].mxu0 }
0x1ae2   :  { %v3672_v55 = vmul.f32 0.35355338, %v3667_v39  ;;  %v4833_v41 = vpop.f32.mrb[27].mxu0  ;;  %v4441_v39 = vld [vmem:[%s5743_s11 + $0x48] sm:$0xff] }
0x1ae3   :  { %v4442_v41 = vld [vmem:[%s5743_s11 + $0x50] sm:$0xff] }
0x1ae4   :  { %v3676_v57 = vsel %vm204_vm2, %v3672_v55, -inf }
0x1ae5   :  { %3677 = vmax.xlane.f32.xlu1 %v3676_v57  ;;  %v4443_v57 = vld [vmem:[%s5743_s11 + $0x58] sm:$0xff] }
0x1af6   :  { %3771 = vrot.lane.b32.xlu1 %v5487_v54, %s5771_s21 }
0x1b3c   :  { %v3687_v63 = vpop.xlane.xlu0 %3686 }
0x1b72   :  { %v3678_v36 = vpop.xlane.xlu1 %3677 }
0x1b73   :  { %v3680_v58 = vsub.f32 %v3672_v55, %v3678_v36  ;;  %v4938_v55 = vpack.c.bf16 %v4441_v39, %v4440_v53  ;;  %v4942_v36 = vpack.c.bf16 %v4443_v57, %v4442_v41  ;;  %v4454_v41 = vld [vmem:[%s5746_s13 + $0x1] ss:$0 sm:$0xff] }
0x1b75   :  { %v3683_v59 = vmul.f32 1.442695, %v3680_v58  ;;  %v4444_v58 = vld [vmem:[%s5743_s11 + $0x60] sm:$0xff] }
0x1b76   :  { %v3772_v60 = vpop.permute.xlu1 %3771 }
0x1b77   :  { %5065 = vpow2.f32 %v3683_v59  ;;  %4840 = vmatpush3.msra.mxu0 %v3772_v60  ;;  %v4445_v59 = vld [vmem:[%s5743_s11 + $0x68] sm:$0xff] }
0x1b78   :  { %5067 = vrcp.f32 %v3687_v63  ;;  %4844 = vmatprep.subr.mxu0 %v4390_v5  ;;  %v4946_v60 = vpack.c.bf16 %v4445_v59, %v4444_v58  ;;  %v4455_v59 = vld [vmem:[%s5747_s14 + $0x1] ss:$0 sm:$0xff] }
0x1b81   :  { %v5066_v61 = vpop.eup %5065 }
0x1b82   :  { %v3688_v62 = vsel %vm204_vm2, %v5066_v61, 0.0  ;;  %v5068_v1 = vpop.eup %5067 }
0x1b83   :  { %3689 = vadd.xlane.f32.xlu0 %v3688_v62  ;;  %v3693_v2 = vmul.f32 %v5068_v1, %v5064_v50  ;;  %v4447_v62 = vld [vmem:[%s5743_s11 + $0x78] sm:$0xff] }
0x1b99   :  { %3695 = vrot.lane.b32.xlu0 %v5489_v56, %s5771_s21 }
0x1c10   :  { %v3690_v0 = vpop.xlane.xlu0 %3689 }
0x1c11   :  { %5069 = vrcp.f32 %v3690_v0  ;;  %v4437_v0 = vld [vmem:[%s5744_s10 + $0x1] ss:$0 sm:$0xff] }
0x1c14   :  { %v3696_v54 = vpop.permute.xlu0 %3695 }
0x1c15   :  { %4835 = vmatpush3.msra.mxu1 %v3696_v54 }
0x1c16   :  { %4837 = vmatmul.mubr.msk.f32.vlgmr.msra.gmra.mrb[44].mxu1 %vm204_vm2, %v3693_v2 }
0x1c1b   :  { %v5070_v3 = vpop.eup %5069 }
0x1c1c   :  { %v3694_v4 = vmul.f32 %v5070_v3, %v5066_v61  ;;  %v4446_v61 = vld [vmem:[%s5743_s11 + $0x70] sm:$0xff] }
0x1c1d   :  { %v4950_v63 = vpack.c.bf16 %v4447_v62, %v4446_v61 }
0x1c1e   :  { %4842 = vmatmul.mubr.msk.f32.vlgmr.msra.gmra.mrb[28].mxu0 %vm204_vm2, %v3694_v4 }
0x1c1f   :  { %4845 = vmatpush3.msra.mxu0 %v4390_v5 }
0x1c20   :  { %4939 = vmatprep.subr.bf16.mxu0 %v4938_v55 }
0x1ce9   :  { %v3767_v56 = vpop.f32.mrb[44].mxu1 }
0x1cea   :  { %v4838_v6 = vpop.f32.mrb[45].mxu1  ;;  %4846 = vmatprep.mubr.msk.f32.mxu0 %vm204_vm2, %v3767_v56 }
0x1cf1   :  { %v3843_v7 = vpop.f32.mrb[28].mxu0 }
0x1cf2   :  { %v4843_v8 = vpop.f32.mrb[29].mxu0  ;;  %4847 = vmatmul.mubr.msk.f32.vlgmr.msra.gmra.mrb[18].mxu0 %vm204_vm2, %v3843_v7 }
0x1cf3   :  { %4941 = vmatpush3.bf16.msra.mxu0 %v4938_v55 }
0x1cf4   :  { %4943 = vmatprep.subr.bf16.mxu0 %v4942_v36 }
0x1cf7   :  { %4945 = vmatpush3.bf16.msra.mxu0 %v4942_v36 }
0x1cf8   :  { %4947 = vmatprep.subr.bf16.mxu0 %v4946_v60 }
0x1cfb   :  { %4949 = vmatpush3.bf16.msra.mxu0 %v4946_v60 }
0x1cfc   :  { %4951 = vmatprep.subr.bf16.mxu0 %v4950_v63 }
0x1cff   :  { %4953 = vmatpush3.bf16.msra.mxu0 %v4950_v63 }
0x1dc5   :  { %v4848_v10 = vpop.f32.mrb[18].mxu0 }
0x1dc6   :  { %v4964_v11 = vadd.f32 %v4848_v10, %v4403_v9  ;;  %v3919_v12 = vpop.f32.mrb[19].mxu0 }
0x1dc7   :  { %v4965_v13 = vadd.f32 %v4403_v9, %v3919_v12 }
0x1dc8   :  { %v3931_v35 = vadd.f32 %v4964_v11, %v5476_v52 }
0x1dc9   :  { %v3930_v33 = vadd.f32 %v4965_v13, %v5474_v51  ;;  %v4432_v51 = vld [vmem:[%s5740_s9 + $0x20] sm:$0xff] }
0x1dca   :  { %v3939_v14 = vsel %vm60_vm0, %v3931_v35, 0.0  ;;  %v4930_v26 = vpack.c.bf16 %v4433_v25, %v4432_v51 }
0x1dcb   :  { %3940 = vadd.xlane.f32.xlu0 %v3939_v14  ;;  %v3936_v15 = vsel %vm60_vm0, %v3930_v33, 0.0 }
0x1dcc   :  { %3937 = vadd.xlane.f32.xlu1 %v3936_v15  ;;  %4931 = vmatprep.subr.bf16.mxu1 %v4930_v26 }
0x1dcd   :  { %4933 = vmatpush3.bf16.msra.mxu1 %v4930_v26 }
0x1dce   :  { %4935 = vmatprep.subr.bf16.mxu1 %v4934_v29 }
0x1dd1   :  { %4937 = vmatpush3.bf16.msra.mxu1 %v4934_v29 }
0x1e58   :  { %v3941_v16 = vpop.xlane.xlu0 %3940 }
0x1e59   :  { %v3943_v17 = vmul.f32 0.03125, %v3941_v16  ;;  %v3938_v18 = vpop.xlane.xlu1 %3937 }
0x1e5a   :  { %v3942_v19 = vmul.f32 0.03125, %v3938_v18 }
0x1e5b   :  { %v3945_v20 = vsub.f32 %v3931_v35, %v3943_v17 }
0x1e5c   :  { %v3944_v21 = vsub.f32 %v3930_v33, %v3942_v19  ;;  %v4449_v19 = vld [vmem:[%s5745_s12 + $0x1] ss:$0 sm:$0xff] }
0x1e5d   :  { %v3947_v22 = vmul.f32 %v3945_v20, %v3945_v20 }
0x1e5e   :  { %v3946_v23 = vmul.f32 %v3944_v21, %v3944_v21 }
0x1e5f   :  { %v3951_v24 = vsel %vm60_vm0, %v3947_v22, 0.0 }
0x1e60   :  { %3952 = vadd.xlane.f32.xlu1 %v3951_v24  ;;  %v3948_v52 = vsel %vm60_vm0, %v3946_v23, 0.0 }
0x1e61   :  { %3949 = vadd.xlane.f32.xlu0 %v3948_v52 }
0x1eed   :  { %v3953_v30 = vpop.xlane.xlu1 %3952 }
0x1eee   :  { %v3955_v31 = vmul.f32 0.03125, %v3953_v30  ;;  %v3950_v32 = vpop.xlane.xlu0 %3949 }
0x1eef   :  { %v3954_v34 = vmul.f32 0.03125, %v3950_v32 }
0x1ef0   :  { %v3957_v37 = vadd.f32 1e-12, %v3955_v31 }
0x1ef1   :  { %v3956_v38 = vadd.f32 1e-12, %v3954_v34 }
0x1ef2   :  { %5071 = vrsqrt.f32 %v3957_v37 }
0x1ef3   :  { %5073 = vrsqrt.f32 %v3956_v38 }
0x1efc   :  { %v5072_v40 = vpop.eup %5071 }
0x1efd   :  { %v5074_v43 = vpop.eup %5073  ;;  %v3961_v44 = vmul.f32 %v5072_v40, %v3945_v20  ;;  %v4236_v40 = vld [vmem:[%s5748_s15] sm:$0xff] }
0x1efe   :  { %v3960_v45 = vmul.f32 %v5074_v43, %v3944_v21 }
0x1eff   :  { %v3969_v47 = vmul.f32 %v4430_v42, %v3961_v44  ;;  %v4238_v44 = vld [vmem:[%s5748_s15 + $0x10] sm:$0xff] }
0x1f00   :  { %v3968_v48 = vmul.f32 %v4430_v42, %v3960_v45  ;;  %v4237_v42 = vld [vmem:[%s5748_s15 + $0x8] sm:$0xff]  ;;  %v4239_v45 = vld [vmem:[%s5748_s15 + $0x18] sm:$0xff] }
0x1f01   :  { %v3977_v50 = vadd.f32 %v4431_v46, %v3969_v47  ;;  %v4954_v43 = vpack.c.bf16 %v4237_v42, %v4236_v40 }
0x1f02   :  { %v3976_v49 = vadd.f32 %v4431_v46, %v3968_v48  ;;  %v4958_v46 = vpack.c.bf16 %v4239_v45, %v4238_v44 }
0x1f03   :  { %4955 = vmatprep.subr.bf16.mxu1 %v4954_v43 }
0x1f04   :  { %4857 = vmatprep.mubr.msk.f32.mxu1 %vm60_vm0, %v3976_v49 }
0x1f05   :  { %4858 = vmatmul.mubr.msk.f32.vlgmr.msra.gmra.mrb[46].mxu1 %vm60_vm0, %v3977_v50 }
0x1f06   :  { %4957 = vmatpush3.bf16.msra.mxu1 %v4954_v43 }
0x1f07   :  { %4959 = vmatprep.subr.bf16.mxu1 %v4958_v46 }
0x1f0a   :  { %4961 = vmatpush3.bf16.msra.mxu1 %v4958_v46 }
0x1fd8   :  { %v4859_v1 = vpop.f32.mrb[46].mxu1 }
0x1fd9   :  { %v4069_v2 = vadd.f32 %v4859_v1, %v4437_v0  ;;  %v4063_v54 = vpop.f32.mrb[47].mxu1 }
0x1fda   :  { %v4064_v3 = vadd.f32 %v4437_v0, %v4063_v54  ;;  %v4456_v0 = vld [vmem:[%s5749_s16] ss:$0 sm:$0xff] }
0x1fdb   :  { %v4075_v4 = vmul.f32 0.044715, %v4069_v2  ;;  %v4073_v16 = vmul.f32 0.5, %v4069_v2 }
0x1fdc   :  { %v4074_v5 = vmul.f32 0.044715, %v4064_v3  ;;  %v4072_v14 = vmul.f32 0.5, %v4064_v3 }
0x1fdd   :  { %v4077_v56 = vmul.f32 %v4075_v4, %v4069_v2 }
0x1fde   :  { %v4076_v6 = vmul.f32 %v4074_v5, %v4064_v3 }
0x1fdf   :  { %v4079_v7 = vmul.f32 %v4077_v56, %v4069_v2 }
0x1fe0   :  { %v4078_v8 = vmul.f32 %v4076_v6, %v4064_v3 }
0x1fe1   :  { %v4081_v9 = vadd.f32 %v4079_v7, %v4069_v2 }
0x1fe2   :  { %v4080_v10 = vadd.f32 %v4078_v8, %v4064_v3 }
0x1fe3   :  { %v4083_v11 = vmul.f32 0.7978846, %v4081_v9 }
0x1fe4   :  { %v4082_v12 = vmul.f32 0.7978846, %v4080_v10 }
0x1fe5   :  { %5075 = vtanh.f32 %v4083_v11 }
0x1fe6   :  { %5077 = vtanh.f32 %v4082_v12 }
0x1fef   :  { %v5076_v13 = vpop.eup %5075 }
0x1ff0   :  { %v5078_v35 = vpop.eup %5077  ;;  %v4087_v33 = vadd.f32 1.0, %v5076_v13 }
0x1ff1   :  { %v4086_v15 = vadd.f32 1.0, %v5078_v35 }
0x1ff2   :  { %v4089_v18 = vmul.f32 %v4087_v33, %v4073_v16 }
0x1ff3   :  { %v4088_v17 = vmul.f32 %v4086_v15, %v4072_v14 }
0x1ff5   :  { %4876 = vmatprep.mubr.msk.f32.mxu0 %vm2037_vm3, %v4088_v17 }
0x1ff6   :  { %4877 = vmatmul.mubr.msk.f32.vlgmr.msra.gmra.mrb[30].mxu0 %vm2037_vm3, %v4089_v18 }
0x20c9   :  { %v4878_v20 = vpop.f32.mrb[30].mxu0 }
0x20ca   :  { %v4185_v21 = vadd.f32 %v4878_v20, %v4449_v19  ;;  %v4179_v22 = vpop.f32.mrb[31].mxu0 }
0x20cb   :  { %v4180_v23 = vadd.f32 %v4449_v19, %v4179_v22 }
0x20cc   :  { %v4189_v24 = vadd.f32 %v4185_v21, %v3977_v50 }
0x20cd   :  { %v4188_v52 = vadd.f32 %v4180_v23, %v3976_v49 }
0x20ce   :  { %v4197_v51 = vsel %vm60_vm0, %v4189_v24, 0.0 }
0x20cf   :  { %4198 = vadd.xlane.f32.xlu1 %v4197_v51  ;;  %v4194_v25 = vsel %vm60_vm0, %v4188_v52, 0.0 }
0x20d0   :  { %4195 = vadd.xlane.f32.xlu0 %v4194_v25 }
0x215c   :  { %v4199_v26 = vpop.xlane.xlu1 %4198 }
0x215d   :  { %v4201_v27 = vmul.f32 0.03125, %v4199_v26  ;;  %v4196_v28 = vpop.xlane.xlu0 %4195 }
0x215e   :  { %v4200_v29 = vmul.f32 0.03125, %v4196_v28 }
0x215f   :  { %v4203_v30 = vsub.f32 %v4189_v24, %v4201_v27 }
0x2160   :  { %v4202_v31 = vsub.f32 %v4188_v52, %v4200_v29 }
0x2161   :  { %v4205_v32 = vmul.f32 %v4203_v30, %v4203_v30 }
0x2162   :  { %v4204_v34 = vmul.f32 %v4202_v31, %v4202_v31 }
0x2163   :  { %v4209_v37 = vsel %vm60_vm0, %v4205_v32, 0.0 }
0x2164   :  { %4210 = vadd.xlane.f32.xlu1 %v4209_v37  ;;  %v4206_v38 = vsel %vm60_vm0, %v4204_v34, 0.0 }
0x2165   :  { %4207 = vadd.xlane.f32.xlu0 %v4206_v38 }
0x21f1   :  { %v4211_v47 = vpop.xlane.xlu1 %4210 }
0x21f2   :  { %v4213_v48 = vmul.f32 0.03125, %v4211_v47  ;;  %v4208_v49 = vpop.xlane.xlu0 %4207 }
0x21f3   :  { %v4212_v50 = vmul.f32 0.03125, %v4208_v49 }
0x21f4   :  { %v4215_v53 = vadd.f32 1e-12, %v4213_v48 }
0x21f5   :  { %v4214_v39 = vadd.f32 1e-12, %v4212_v50 }
0x21f6   :  { %5079 = vrsqrt.f32 %v4215_v53 }
0x21f7   :  { %5081 = vrsqrt.f32 %v4214_v39 }
0x2200   :  { %v5080_v55 = vpop.eup %5079 }
0x2201   :  { %v5082_v57 = vpop.eup %5081  ;;  %v4219_v36 = vmul.f32 %v5080_v55, %v4203_v30 }
0x2202   :  { %v4218_v58 = vmul.f32 %v5082_v57, %v4202_v31 }
0x2203   :  { %v4227_v60 = vmul.f32 %v4454_v41, %v4219_v36 }
0x2204   :  { %v4226_v61 = vmul.f32 %v4454_v41, %v4218_v58 }
0x2205   :  { %v4235_v63 = vadd.f32 %v4455_v59, %v4227_v60 }
0x2206   :  { %v4234_v62 = vadd.f32 %v4455_v59, %v4226_v61 }
0x2208   :  { %4887 = vmatprep.mubr.msk.f32.mxu1 %vm60_vm0, %v4234_v62 }
0x2209   :  { %4888 = vmatmul.mubr.msk.f32.vlgmr.msra.gmra.mrb[48].mxu1 %vm60_vm0, %v4235_v63 }
0x22dc   :  { %v4889_v1 = vpop.f32.mrb[48].mxu1 }
0x22dd   :  { %v4325_v2 = vadd.f32 %v4889_v1, %v4456_v0  ;;  %v4319_v54 = vpop.f32.mrb[49].mxu1 }
0x22de   :  { %v4320_v3 = vadd.f32 %v4456_v0, %v4319_v54 }
0x22df   :  { %4329 = vst [vmem:[%s5750_s17 + $0x8] sm:$0xff] %v4325_v2 }
0x22e0   :  { %4328 = vst [vmem:[%s5750_s17] sm:$0xff] %v4320_v3 }

</bundles_post_ra>
